<compile_context>
chip_gen: v7x
topology: tpu7x:2x2x1
jax: 0.10.0
libtpu: 0.0.40
codegen_flags: <defaults>
</compile_context>

<pallas_src>
import functools

import jax
import jax.numpy as jnp
from jax.experimental import pallas as pl
from jax.experimental.pallas import tpu as pltpu


# ---------------------------------------------------------------------------
# Model geometry implied by the PyTorch module
# ---------------------------------------------------------------------------
H_IN, W_IN = 24, 14              # forced by view(-1, 3*20*10) after two VALID 3x3 convs
KH = KW = 3
H1, W1 = H_IN - 2, W_IN - 2      # 22, 12
H2, W2 = H1 - 2, W1 - 2          # 20, 10
C1_OUT, C2_OUT = 3, 3
D_IN = 1 * H_IN * W_IN           # 336
D_A1 = C1_OUT * H1 * W1          # 792
D_A2 = C2_OUT * H2 * W2          # 600   (== PyTorch flatten width)
D_H = 108
D_OUT = 36
D_H_PAD = 128                    # fc1 hidden padded to a full lane width
D_OUT_PAD = 128                  # fc2 output padded to a full lane width


# ---------------------------------------------------------------------------
# Fused Pallas kernel: conv1+relu, conv2+relu, fc1+relu, fc2 as 4 matmuls.
# Weights are bf16; accumulation / bias / ReLU in f32.
# ---------------------------------------------------------------------------
def fused_net_kernel(x_ref, m1_ref, b1_ref, m2_ref, b2_ref,
                     w1_ref, fb1_ref, w2_ref, fb2_ref, o_ref):
    bf16 = jnp.bfloat16
    x = x_ref[...].astype(bf16)                                          # (NB, 336)
    a1 = jnp.dot(x, m1_ref[...], preferred_element_type=jnp.float32)
    a1 = jnp.maximum(a1 + b1_ref[...], 0.0)                              # (NB, 792) f32
    a2 = jnp.dot(a1.astype(bf16), m2_ref[...],
                 preferred_element_type=jnp.float32)
    a2 = jnp.maximum(a2 + b2_ref[...], 0.0)                              # (NB, 600) f32, CHW order
    h = jnp.dot(a2.astype(bf16), w1_ref[...],
                preferred_element_type=jnp.float32)
    h = jnp.maximum(h + fb1_ref[...], 0.0)                               # (NB, 128) f32
    o = jnp.dot(h.astype(bf16), w2_ref[...],
                preferred_element_type=jnp.float32)
    o_ref[...] = (o + fb2_ref[...]).astype(o_ref.dtype)                  # (NB, 128)


# ---------------------------------------------------------------------------
# One-time weight preprocessing (off the hot path)
# ---------------------------------------------------------------------------
def _conv_to_dense(w, h_in, w_in):
    """3x3 VALID conv with OIHW weights -> dense (Cin*H*W, Cout*Ho*Wo) matrix.

    Column order is (co, ho, wo) i.e. exactly PyTorch's CHW flatten order, and
    row order is (ci, hi, wi), matching a row-major flatten of the input.
    """
    c_out, c_in, kh, kw = w.shape
    h_out, w_out = h_in - kh + 1, w_in - kw + 1
    hi = jnp.arange(h_in)[:, None, None]
    ho = jnp.arange(h_out)[None, :, None]
    di = jnp.arange(kh)[None, None, :]
    sel_h = (hi == ho + di).astype(w.dtype)                 # (H, Ho, KH)
    wi = jnp.arange(w_in)[:, None, None]
    wo = jnp.arange(w_out)[None, :, None]
    dj = jnp.arange(kw)[None, None, :]
    sel_w = (wi == wo + dj).astype(w.dtype)                 # (W, Wo, KW)
    # m[ci, hi, wi, co, ho, wo] = w[co, ci, hi-ho, wi-wo]  (0 outside the 3x3 window)
    m = jnp.einsum('xad,ybe,oide->ixyoab', sel_h, sel_w, w)
    return m.reshape(c_in * h_in * w_in, c_out * h_out * w_out)


def prepare_params(params):
    """PyTorch-layout params -> kernel-ready matrices.  Call once at load time.

    Matmul weights are stored in bf16 (MXU-native); biases stay f32.  The fc
    hidden (108) and output (36) widths are zero-padded to 128 lanes.
    """
    cw1, cb1, cw2, cb2, fw1, fb1, fw2, fb2 = params
    f32, bf16 = jnp.float32, jnp.bfloat16
    m1 = _conv_to_dense(cw1.astype(f32), H_IN, W_IN).astype(bf16)      # (336, 792)
    b1 = jnp.repeat(cb1.astype(f32), H1 * W1)[None, :]                 # (1, 792)  (co-major)
    m2 = _conv_to_dense(cw2.astype(f32), H1, W1).astype(bf16)          # (792, 600)
    b2 = jnp.repeat(cb2.astype(f32), H2 * W2)[None, :]                 # (1, 600)
    # fc1: (600, 108) -> (600, 128), extra columns zero.
    w1 = jnp.zeros((D_A2, D_H_PAD), f32).at[:, :D_H].set(fw1.T.astype(f32)).astype(bf16)
    fb1p = jnp.zeros((1, D_H_PAD), f32).at[0, :D_H].set(fb1.astype(f32))
    # fc2: (108, 36) -> (128, 128), extra rows/columns zero.
    w2 = jnp.zeros((D_H_PAD, D_OUT_PAD), f32).at[:D_H, :D_OUT].set(fw2.T.astype(f32)).astype(bf16)
    fb2p = jnp.zeros((1, D_OUT_PAD), f32).at[0, :D_OUT].set(fb2.astype(f32))
    return (m1, b1, m2, b2, w1, fb1p, w2, fb2p)


# ---------------------------------------------------------------------------
# Forward pass wrapper (single fused pallas_call, batch-parallel grid)
# ---------------------------------------------------------------------------
def _round_up(x, m):
    return (x + m - 1) // m * m


@functools.partial(jax.jit, static_argnames=("batch_tile",))
def net_forward(x, kparams, batch_tile=512):
    m1, b1, m2, b2, w1, fb1, w2, fb2 = kparams
    n = x.shape[0]
    x_flat = x.reshape(n, D_IN).astype(jnp.float32)         # row-major == (c,h,w) flatten

    # Batch tiling:
    #   * sublane-aligned tile (multiple of 8),
    #   * >= 2 grid blocks whenever batch >= 16 so the "parallel" axis shards
    #     across both TensorCores on v7x,
    #   * padding waste bounded to < 8 rows per block (no rounding the batch
    #     up to a full multiple of a large tile).
    bt = max(8, _round_up(batch_tile, 8))
    n8 = _round_up(n, 8)
    num_blocks = max(pl.cdiv(n8, bt), 2 if n8 >= 16 else 1)
    nb = _round_up(pl.cdiv(n8, num_blocks), 8)
    n_pad = nb * num_blocks
    if n_pad != n:
        x_flat = jnp.pad(x_flat, ((0, n_pad - n), (0, 0)))

    def full(arr):
        nd = arr.ndim
        return pl.BlockSpec(arr.shape, lambda i, _nd=nd: (0,) * _nd)

    flops = 2 * n_pad * (D_IN * D_A1 + D_A1 * D_A2
                         + D_A2 * D_H_PAD + D_H_PAD * D_OUT_PAD)
    w_bytes = sum(a.size * a.dtype.itemsize
                  for a in (m1, b1, m2, b2, w1, fb1, w2, fb2))
    cost = pl.CostEstimate(
        flops=flops, transcendentals=0,
        bytes_accessed=4 * (x_flat.size + n_pad * D_OUT_PAD) + w_bytes)

    out = pl.pallas_call(
        fused_net_kernel,
        out_shape=jax.ShapeDtypeStruct((n_pad, D_OUT_PAD), jnp.float32),
        grid=(num_blocks,),
        in_specs=[
            pl.BlockSpec((nb, D_IN), lambda i: (i, 0)),     # activations: tiled over batch
            full(m1), full(b1), full(m2), full(b2),         # weights: constant blocks,
            full(w1), full(fb1), full(w2), full(fb2),       # fetched once
        ],
        out_specs=pl.BlockSpec((nb, D_OUT_PAD), lambda i: (i, 0)),
        compiler_params=pltpu.CompilerParams(
            dimension_semantics=("parallel",),
            vmem_limit_bytes=32 * 1024 * 1024),             # explicit: covers v5e's 16 MiB default
        cost_estimate=cost,
    )(x_flat, m1, b1, m2, b2, w1, fb1, w2, fb2)
    return out[:n, :D_OUT]


# ---------------------------------------------------------------------------
# Pure-JAX f32 reference (correctness check only)
# ---------------------------------------------------------------------------
def ref_forward(x, params):
    cw1, cb1, cw2, cb2, fw1, fb1, fw2, fb2 = params
    dn = ('NCHW', 'OIHW', 'NCHW')
    y = jax.lax.conv_general_dilated(x, cw1, (1, 1), 'VALID', dimension_numbers=dn)
    y = jnp.maximum(y + cb1.reshape(1, -1, 1, 1), 0.0)
    y = jax.lax.conv_general_dilated(y, cw2, (1, 1), 'VALID', dimension_numbers=dn)
    y = jnp.maximum(y + cb2.reshape(1, -1, 1, 1), 0.0)
    y = y.reshape(y.shape[0], -1)
    y = jnp.maximum(y @ fw1.T + fb1, 0.0)
    return y @ fw2.T + fb2


# ---------------------------------------------------------------------------
def make_params(key):
    ks = jax.random.split(key, 8)
    cw1 = jax.random.normal(ks[0], (3, 1, 3, 3), jnp.float32) * 0.2   # OIHW
    cb1 = jax.random.normal(ks[1], (3,), jnp.float32) * 0.1
    cw2 = jax.random.normal(ks[2], (3, 3, 3, 3), jnp.float32) * 0.2   # OIHW
    cb2 = jax.random.normal(ks[3], (3,), jnp.float32) * 0.1
    fw1 = jax.random.normal(ks[4], (108, 600), jnp.float32) * 0.05    # (out, in) PyTorch style
    fb1 = jax.random.normal(ks[5], (108,), jnp.float32) * 0.1
    fw2 = jax.random.normal(ks[6], (36, 108), jnp.float32) * 0.05
    fb2 = jax.random.normal(ks[7], (36,), jnp.float32) * 0.1
    return (cw1, cb1, cw2, cb2, fw1, fb1, fw2, fb2)


if __name__ == "__main__":
    key = jax.random.PRNGKey(0)
    k_x, k_x2, k_p = jax.random.split(key, 3)

    params = make_params(k_p)
    kparams = prepare_params(params)   # one-time weight re-layout, off the hot path

    # Input shape implied by the module: (N, 1, 24, 14) so the flatten is 600.
    x = jax.random.normal(k_x, (2, 1, 24, 14), jnp.float32)
    out = jax.block_until_ready(net_forward(x, kparams))
    ref = jax.block_until_ready(ref_forward(x, params))
    assert out.shape == (2, 36), out.shape
    # bf16 MXU operands -> looser tolerance than the f32 reference.
    assert jnp.allclose(out, ref, rtol=3e-2, atol=3e-2), (
        float(jnp.max(jnp.abs(out - ref))))

    # Second batch size to exercise the multi-block "parallel" grid + padding.
    x2 = jax.random.normal(k_x2, (20, 1, 24, 14), jnp.float32)
    out2 = jax.block_until_ready(net_forward(x2, kparams))
    ref2 = jax.block_until_ready(ref_forward(x2, params))
    assert out2.shape == (20, 36), out2.shape
    assert jnp.allclose(out2, ref2, rtol=3e-2, atol=3e-2), (
        float(jnp.max(jnp.abs(out2 - ref2))))

    print("KERNEL_OK")
</pallas_src>

<mosaic_0001>
module attributes {stable_mosaic.version = 11 : i64} {
  func.func @fused_net_kernel(%arg0: i32, %arg1: memref<8x336xf32, #tpu.memory_space<vmem>>, %arg2: memref<336x792xbf16, #tpu.memory_space<vmem>>, %arg3: memref<1x792xf32, #tpu.memory_space<vmem>>, %arg4: memref<792x600xbf16, #tpu.memory_space<vmem>>, %arg5: memref<1x600xf32, #tpu.memory_space<vmem>>, %arg6: memref<600x128xbf16, #tpu.memory_space<vmem>>, %arg7: memref<1x128xf32, #tpu.memory_space<vmem>>, %arg8: memref<128x128xbf16, #tpu.memory_space<vmem>>, %arg9: memref<1x128xf32, #tpu.memory_space<vmem>>, %arg10: memref<8x128xf32, #tpu.memory_space<vmem>>) attributes {dimension_semantics = [#tpu.dimension_semantics<parallel>], iteration_bounds = array<i64: 1>, scalar_prefetch = 0 : i64, scratch_operands = 0 : i64, tpu.core_type = #tpu.core_type<tc>, window_params = [{transform_indices = @transform_0, window_bounds = array<i64: 8, 336>}, {pipeline_mode = #tpu.pipeline_mode<synchronous>, transform_indices = @transform_1, window_bounds = array<i64: 336, 792>}, {pipeline_mode = #tpu.pipeline_mode<synchronous>, transform_indices = @transform_2, window_bounds = array<i64: 1, 792>}, {pipeline_mode = #tpu.pipeline_mode<synchronous>, transform_indices = @transform_3, window_bounds = array<i64: 792, 600>}, {pipeline_mode = #tpu.pipeline_mode<synchronous>, transform_indices = @transform_4, window_bounds = array<i64: 1, 600>}, {pipeline_mode = #tpu.pipeline_mode<synchronous>, transform_indices = @transform_5, window_bounds = array<i64: 600, 128>}, {pipeline_mode = #tpu.pipeline_mode<synchronous>, transform_indices = @transform_6, window_bounds = array<i64: 1, 128>}, {pipeline_mode = #tpu.pipeline_mode<synchronous>, transform_indices = @transform_7, window_bounds = array<i64: 128, 128>}, {pipeline_mode = #tpu.pipeline_mode<synchronous>, transform_indices = @transform_8, window_bounds = array<i64: 1, 128>}, {transform_indices = @transform_9, window_bounds = array<i64: 8, 128>}]} {
    %c0 = arith.constant 0 : index
    %c0_0 = arith.constant 0 : index
    %0 = vector.load %arg1[%c0, %c0_0] : memref<8x336xf32, #tpu.memory_space<vmem>>, vector<8x336xf32>
    %1 = arith.truncf %0 : vector<8x336xf32> to vector<8x336xbf16>
    %c0_1 = arith.constant 0 : index
    %c0_2 = arith.constant 0 : index
    %2 = vector.load %arg2[%c0_1, %c0_2] : memref<336x792xbf16, #tpu.memory_space<vmem>>, vector<336x792xbf16>
    %cst = arith.constant dense<0.000000e+00> : vector<8x792xf32>
    %3 = tpu.matmul %1, %2, %cst {dimension_numbers = #tpu.dot_dimension_numbers<[1], [0], [0], [1], [0, 0, 1, 1], [], []>} : vector<8x336xbf16>, vector<336x792xbf16>, vector<8x792xf32> -> vector<8x792xf32>
    %c0_3 = arith.constant 0 : index
    %c0_4 = arith.constant 0 : index
    %4 = vector.load %arg3[%c0_3, %c0_4] : memref<1x792xf32, #tpu.memory_space<vmem>>, vector<1x792xf32>
    %5 = vector.broadcast %4 : vector<1x792xf32> to vector<8x792xf32>
    %6 = arith.addf %3, %5 : vector<8x792xf32>
    %cst_5 = arith.constant 0.000000e+00 : f32
    %7 = vector.broadcast %cst_5 : f32 to vector<8x792xf32>
    %8 = arith.maximumf %6, %7 : vector<8x792xf32>
    %9 = arith.truncf %8 : vector<8x792xf32> to vector<8x792xbf16>
    %c0_6 = arith.constant 0 : index
    %c0_7 = arith.constant 0 : index
    %10 = vector.load %arg4[%c0_6, %c0_7] : memref<792x600xbf16, #tpu.memory_space<vmem>>, vector<792x600xbf16>
    %cst_8 = arith.constant dense<0.000000e+00> : vector<8x600xf32>
    %11 = tpu.matmul %9, %10, %cst_8 {dimension_numbers = #tpu.dot_dimension_numbers<[1], [0], [0], [1], [0, 0, 1, 1], [], []>} : vector<8x792xbf16>, vector<792x600xbf16>, vector<8x600xf32> -> vector<8x600xf32>
    %c0_9 = arith.constant 0 : index
    %c0_10 = arith.constant 0 : index
    %12 = vector.load %arg5[%c0_9, %c0_10] : memref<1x600xf32, #tpu.memory_space<vmem>>, vector<1x600xf32>
    %13 = vector.broadcast %12 : vector<1x600xf32> to vector<8x600xf32>
    %14 = arith.addf %11, %13 : vector<8x600xf32>
    %cst_11 = arith.constant 0.000000e+00 : f32
    %15 = vector.broadcast %cst_11 : f32 to vector<8x600xf32>
    %16 = arith.maximumf %14, %15 : vector<8x600xf32>
    %17 = arith.truncf %16 : vector<8x600xf32> to vector<8x600xbf16>
    %c0_12 = arith.constant 0 : index
    %c0_13 = arith.constant 0 : index
    %18 = vector.load %arg6[%c0_12, %c0_13] : memref<600x128xbf16, #tpu.memory_space<vmem>>, vector<600x128xbf16>
    %cst_14 = arith.constant dense<0.000000e+00> : vector<8x128xf32>
    %19 = tpu.matmul %17, %18, %cst_14 {dimension_numbers = #tpu.dot_dimension_numbers<[1], [0], [0], [1], [0, 0, 1, 1], [], []>} : vector<8x600xbf16>, vector<600x128xbf16>, vector<8x128xf32> -> vector<8x128xf32>
    %c0_15 = arith.constant 0 : index
    %c0_16 = arith.constant 0 : index
    %20 = vector.load %arg7[%c0_15, %c0_16] : memref<1x128xf32, #tpu.memory_space<vmem>>, vector<1x128xf32>
    %21 = vector.broadcast %20 : vector<1x128xf32> to vector<8x128xf32>
    %22 = arith.addf %19, %21 : vector<8x128xf32>
    %cst_17 = arith.constant 0.000000e+00 : f32
    %23 = vector.broadcast %cst_17 : f32 to vector<8x128xf32>
    %24 = arith.maximumf %22, %23 : vector<8x128xf32>
    %25 = arith.truncf %24 : vector<8x128xf32> to vector<8x128xbf16>
    %c0_18 = arith.constant 0 : index
    %c0_19 = arith.constant 0 : index
    %26 = vector.load %arg8[%c0_18, %c0_19] : memref<128x128xbf16, #tpu.memory_space<vmem>>, vector<128x128xbf16>
    %cst_20 = arith.constant dense<0.000000e+00> : vector<8x128xf32>
    %27 = tpu.matmul %25, %26, %cst_20 {dimension_numbers = #tpu.dot_dimension_numbers<[1], [0], [0], [1], [0, 0, 1, 1], [], []>} : vector<8x128xbf16>, vector<128x128xbf16>, vector<8x128xf32> -> vector<8x128xf32>
    %c0_21 = arith.constant 0 : index
    %c0_22 = arith.constant 0 : index
    %28 = vector.load %arg9[%c0_21, %c0_22] : memref<1x128xf32, #tpu.memory_space<vmem>>, vector<1x128xf32>
    %29 = vector.broadcast %28 : vector<1x128xf32> to vector<8x128xf32>
    %30 = arith.addf %27, %29 : vector<8x128xf32>
    %c0_23 = arith.constant 0 : index
    %c0_24 = arith.constant 0 : index
    %31 = vector.load %arg10[%c0_23, %c0_24] : memref<8x128xf32, #tpu.memory_space<vmem>>, vector<8x128xf32>
    tpu.vector_store %arg10[%c0_23, %c0_24], %30 {strides = array<i32>} : memref<8x128xf32, #tpu.memory_space<vmem>>, vector<8x128xf32>,
    return
  }
  func.func @transform_0(%arg0: i32) -> (i32, i32) {
    %c0_i32 = arith.constant 0 : i32
    %c0_i32_0 = arith.constant 0 : i32
    return %arg0, %c0_i32 : i32, i32
  }
  func.func @transform_1(%arg0: i32) -> (i32, i32) {
    %c0_i32 = arith.constant 0 : i32
    %c0_i32_0 = arith.constant 0 : i32
    %c0_i32_1 = arith.constant 0 : i32
    return %c0_i32, %c0_i32_0 : i32, i32
  }
  func.func @transform_2(%arg0: i32) -> (i32, i32) {
    %c0_i32 = arith.constant 0 : i32
    %c0_i32_0 = arith.constant 0 : i32
    %c0_i32_1 = arith.constant 0 : i32
    return %c0_i32, %c0_i32_0 : i32, i32
  }
  func.func @transform_3(%arg0: i32) -> (i32, i32) {
    %c0_i32 = arith.constant 0 : i32
    %c0_i32_0 = arith.constant 0 : i32
    %c0_i32_1 = arith.constant 0 : i32
    return %c0_i32, %c0_i32_0 : i32, i32
  }
  func.func @transform_4(%arg0: i32) -> (i32, i32) {
    %c0_i32 = arith.constant 0 : i32
    %c0_i32_0 = arith.constant 0 : i32
    %c0_i32_1 = arith.constant 0 : i32
    return %c0_i32, %c0_i32_0 : i32, i32
  }
  func.func @transform_5(%arg0: i32) -> (i32, i32) {
    %c0_i32 = arith.constant 0 : i32
    %c0_i32_0 = arith.constant 0 : i32
    %c0_i32_1 = arith.constant 0 : i32
    return %c0_i32, %c0_i32_0 : i32, i32
  }
  func.func @transform_6(%arg0: i32) -> (i32, i32) {
    %c0_i32 = arith.constant 0 : i32
    %c0_i32_0 = arith.constant 0 : i32
    %c0_i32_1 = arith.constant 0 : i32
    return %c0_i32, %c0_i32_0 : i32, i32
  }
  func.func @transform_7(%arg0: i32) -> (i32, i32) {
    %c0_i32 = arith.constant 0 : i32
    %c0_i32_0 = arith.constant 0 : i32
    %c0_i32_1 = arith.constant 0 : i32
    return %c0_i32, %c0_i32_0 : i32, i32
  }
  func.func @transform_8(%arg0: i32) -> (i32, i32) {
    %c0_i32 = arith.constant 0 : i32
    %c0_i32_0 = arith.constant 0 : i32
    %c0_i32_1 = arith.constant 0 : i32
    return %c0_i32, %c0_i32_0 : i32, i32
  }
  func.func @transform_9(%arg0: i32) -> (i32, i32) {
    %c0_i32 = arith.constant 0 : i32
    %c0_i32_0 = arith.constant 0 : i32
    return %arg0, %c0_i32 : i32, i32
  }
}

</mosaic_0001>

<bundles_post_ra>
// kernel: net_forward.1
= control target key start
LH: loop header
LB: loop body
LE: loop exit
PB: predicated region body
PF: predicated region fallthrough
CT: control target
= control target key end

     0   :  { %14 = vsyncpa [#allocation3], 0  ;;  %s5761_s0 = inlined_call_operand.vmem [shape: f32[8,336], index: 0, kind: input, shape index: {}]   ;;  %s5762_s1 = inlined_call_operand.hbm [shape: bf16[336,792], index: 1, kind: input, shape index: {}]   ;;  %s5763_s2 = inlined_call_operand.vmem [shape: f32[1,792], index: 2, kind: input, shape index: {}]   ;;  %s5764_s3 = inlined_call_operand.hbm [shape: bf16[792,600], index: 3, kind: input, shape index: {}]   ;;  %s5765_s4 = inlined_call_operand.vmem [shape: f32[1,600], index: 4, kind: input, shape index: {}]   ;;  %s5766_s5 = inlined_call_operand.hbm [shape: bf16[600,128], index: 5, kind: input, shape index: {}]   ;;  %s5767_s6 = inlined_call_operand.vmem [shape: f32[1,128], index: 6, kind: input, shape index: {}]   ;;  %s5768_s7 = inlined_call_operand.vmem [shape: bf16[128,128], index: 7, kind: input, shape index: {}]   ;;  %s5769_s8 = inlined_call_operand.vmem [shape: f32[1,128], index: 8, kind: input, shape index: {}]   ;;  %s5770_s9 = inlined_call_operand.vmem [shape: f32[8,128], index: 9, kind: output, shape index: {}]  }
   0x1   :  { %15 = vsyncpa [#allocation5], 0  ;;  %s5468_s30 = smov [#allocation4]   ;;  %s5398_s13 = scalar_lea.hbm %s5764_s3, 31680 }
   0x2   :  { %s37_s10 = sshll.u32 %s5468_s30, 4  ;;  %p5399_p0 = scmp.ne.s32.totalorder %s5764_s3, %s5398_s13  ;;  %s38_s10 = int_to_ptr.vmem [resolvable:$true] %s37_s10 }
   0x3   :  { %p5402_p1 = scmp.lt.u32.totalorder %s5398_s13, %s5764_s3 }
   0x5   :  { %p5404_p2 = pnand %p5402_p1, %p5399_p0 }
   0x7   :  { %5407 = shalt.err (!%p5404_p2)
}
   0x8   :  { %s5408_s18 = scalar_lea.vmem %s38_s10, 31680  ;;  %p5413_p4 = scmp.lt.s32.totalorder %s38_s10, %s38_s10 }
   0x9   :  { %p5409_p3 = scmp.ne.s32.totalorder %s38_s10, %s5408_s18  ;;  %p5414_p5 = scmp.lt.s32.totalorder %s5408_s18, %s5408_s18 }
   0xb   :  { %p5415_p6 = por %p5414_p5, %p5413_p4 }
   0xd   :  { %p5416_p7 = pnand %p5415_p6, %p5409_p3 }
   0xf   :  { %5419 = shalt.err (!%p5416_p7)
}
  0x10   :  { %s5469_s19 = smov 320   ;;  %s5470_s20 = smov 20  }
  0x11   :  { %43 = dma.hbm_to_vmem [thread:$0]  %s5764_s3, 31680, %s38_s10, [#allocation5], %s5469_s19, %s5469_s19, %s5470_s20  }
  0x12   :  { %s5471_s23 = smov [#allocation2]   ;;  %s5420_s27 = scalar_lea.hbm %s5762_s1, 18816 }
  0x13   :  { %s23_s24 = sshll.u32 %s5471_s23, 4  ;;  %p5421_p8 = scmp.ne.s32.totalorder %s5762_s1, %s5420_s27  ;;  %s24_s24 = int_to_ptr.vmem [resolvable:$true] %s23_s24 }
  0x14   :  { %p5424_p9 = scmp.lt.u32.totalorder %s5420_s27, %s5762_s1 }
  0x16   :  { %p5426_p10 = pnand %p5424_p9, %p5421_p8 }
  0x18   :  { %5429 = shalt.err (!%p5426_p10)
}
  0x19   :  { %s5430_s12 = scalar_lea.vmem %s24_s24, 18816  ;;  %p5435_p12 = scmp.lt.s32.totalorder %s24_s24, %s24_s24 }
  0x1a   :  { %p5431_p11 = scmp.ne.s32.totalorder %s24_s24, %s5430_s12  ;;  %p5436_p13 = scmp.lt.s32.totalorder %s5430_s12, %s5430_s12 }
  0x1c   :  { %p5437_p0 = por %p5436_p13, %p5435_p12 }
  0x1e   :  { %p5438_p1 = pnand %p5437_p0, %p5431_p11 }
  0x20   :  { %5441 = shalt.err (!%p5438_p1)
}
  0x21   :  { %s5472_s3 = smov 448   ;;  %s5473_s10 = smov 28  }
  0x22   :  { %29 = dma.hbm_to_vmem [thread:$0]  %s5762_s1, 18816, %s24_s24, [#allocation3], %s5472_s3, %s5472_s3, %s5473_s10  }
  0x23   :  { %s5474_s15 = smov [#allocation6]   ;;  %s5442_s19 = scalar_lea.hbm %s5766_s5, 4800 }
  0x24   :  { %s51_s16 = sshll.u32 %s5474_s15, 4  ;;  %p5443_p2 = scmp.ne.s32.totalorder %s5766_s5, %s5442_s19  ;;  %s52_s16 = int_to_ptr.vmem [resolvable:$true] %s51_s16 }
  0x25   :  { %p5446_p3 = scmp.lt.u32.totalorder %s5442_s19, %s5766_s5 }
  0x27   :  { %p5448_p4 = pnand %p5446_p3, %p5443_p2 }
  0x29   :  { %5451 = shalt.err (!%p5448_p4)
}
  0x2a   :  { %s5452_s25 = scalar_lea.vmem %s52_s16, 4800  ;;  %p5457_p6 = scmp.lt.s32.totalorder %s52_s16, %s52_s16 }
  0x2b   :  { %p5453_p5 = scmp.ne.s32.totalorder %s52_s16, %s5452_s25  ;;  %p5458_p7 = scmp.lt.s32.totalorder %s5452_s25, %s5452_s25 }
  0x2d   :  { %p5459_p8 = por %p5458_p7, %p5457_p6 }
  0x2f   :  { %p5460_p9 = pnand %p5459_p8, %p5453_p5 }
  0x31   :  { %5463 = shalt.err (!%p5460_p9)
}
  0x32   :  { %s5475_s1 = smov 64   ;;  %s5476_s24 = smov 4  }
  0x33   :  { %57 = dma.hbm_to_vmem [thread:$0]  %s5766_s5, 4800, %s52_s16, [#allocation5], %s5475_s1, %s5475_s1, %s5476_s24  }
  0x34   :  { %5464 = dma.done.wait [#allocation3], 18816  }
  0x35   :  { %5465 = vsyncadd [#allocation3], 4294948480 }
  0x36   :  { %5466 = dma.done.wait [#allocation5], 36480  }
  0x37   :  { %5467 = vsyncadd [#allocation5], 4294930816  ;;  %v4794_v0 = vld [vmem:[#allocation2 + $0x4] ss:$28 sps:$4 sm:$0xff]   ;;  %v4797_v2 = vld [vmem:[#allocation2 + $0x3c] ss:$28 sps:$4 sm:$0xff]  }
  0x38   :  { %v4796_v1 = vld [vmem:[#allocation2] ss:$28 sps:$4 sm:$0xff]   ;;  %1045 = vmatprep.subr.bf16.mxu0 %v4794_v0  ;;  %v4799_v3 = vld [vmem:[#allocation2 + $0x38] ss:$28 sps:$4 sm:$0xff]   ;;  %v4802_v5 = vld [vmem:[#allocation2 + $0x70] ss:$28 sps:$4 sm:$0xff]  }
  0x39   :  { %1046 = vmatpush1.bf16.msra.mxu0 %v4796_v1  ;;  %v4800_v4 = vld [vmem:[#allocation2 + $0x74] ss:$28 sps:$4 sm:$0xff]   ;;  %v4803_v6 = vld [vmem:[#allocation2 + $0xac] ss:$28 sps:$4 sm:$0xff]   ;;  %v4806_v8 = vld [vmem:[#allocation2 + $0xe4] ss:$28 sps:$4 sm:$0xff]  }
  0x3a   :  { %1047 = vmatprep.subr.bf16.mxu0 %v4797_v2  ;;  %v4805_v7 = vld [vmem:[#allocation2 + $0xa8] ss:$28 sps:$4 sm:$0xff]   ;;  %v4808_v9 = vld [vmem:[#allocation2 + $0xe0] ss:$28 sps:$4 sm:$0xff]   ;;  %v4811_v15 = vld [vmem:[#allocation2 + $0x118] ss:$28 sps:$4 sm:$0xff]  }
  0x3b   :  { %v4827_v10 = vld [vmem:[#allocation2 + $0xc] ss:$28 sps:$4 sm:$0xff]   ;;  %v4809_v12 = vld [vmem:[#allocation2 + $0x11c] ss:$28 sps:$4 sm:$0xff]   ;;  %v4833_v13 = vld [vmem:[#allocation2 + $0x44] ss:$28 sps:$4 sm:$0xff]  }
  0x3c   :  { %v4829_v11 = vld [vmem:[#allocation2 + $0x8] ss:$28 sps:$4 sm:$0xff]   ;;  %1127 = vmatprep.subr.bf16.mxu1 %v4827_v10  ;;  %v4835_v14 = vld [vmem:[#allocation2 + $0x40] ss:$28 sps:$4 sm:$0xff]   ;;  %v4812_v16 = vld [vmem:[#allocation2 + $0x154] ss:$28 sps:$4 sm:$0xff]  }
  0x3d   :  { %1048 = vmatpush1.bf16.msra.mxu0 %v4799_v3  ;;  %1128 = vmatpush1.bf16.msra.mxu1 %v4829_v11  ;;  %v4839_v17 = vld [vmem:[#allocation2 + $0x7c] ss:$28 sps:$4 sm:$0xff]   ;;  %v4814_v19 = vld [vmem:[#allocation2 + $0x150] ss:$28 sps:$4 sm:$0xff]   ;;  %v4817_v23 = vld [vmem:[#allocation2 + $0x188] ss:$28 sps:$4 sm:$0xff]  }
  0x3e   :  { %1049 = vmatprep.subr.bf16.mxu0 %v4800_v4  ;;  %1129 = vmatprep.subr.bf16.mxu1 %v4833_v13  ;;  %v4841_v18 = vld [vmem:[#allocation2 + $0x78] ss:$28 sps:$4 sm:$0xff]   ;;  %v4815_v21 = vld [vmem:[#allocation2 + $0x18c] ss:$28 sps:$4 sm:$0xff]   ;;  %v4818_v25 = vld [vmem:[#allocation2 + $0x1c4] ss:$28 sps:$4 sm:$0xff]  }
  0x3f   :  { %v4845_v20 = vld [vmem:[#allocation2 + $0xb4] ss:$28 sps:$4 sm:$0xff]   ;;  %v4851_v24 = vld [vmem:[#allocation2 + $0xec] ss:$28 sps:$4 sm:$0xff]   ;;  %v4820_v27 = vld [vmem:[#allocation2 + $0x1c0] ss:$28 sps:$4 sm:$0xff]  }
  0x40   :  { %v4847_v22 = vld [vmem:[#allocation2 + $0xb0] ss:$28 sps:$4 sm:$0xff]   ;;  %v4853_v28 = vld [vmem:[#allocation2 + $0xe8] ss:$28 sps:$4 sm:$0xff]   ;;  %v4821_v31 = vld [vmem:[#allocation2 + $0x1fc] ss:$28 sps:$4 sm:$0xff]  }
  0x41   :  { %1050 = vmatpush1.bf16.msra.mxu0 %v4802_v5  ;;  %1130 = vmatpush1.bf16.msra.mxu1 %v4835_v14  ;;  %v75_v26 = vld [vmem:[%s5761_s0 + $0x8] sm:$0xff]  ;;  %v4857_v30 = vld [vmem:[#allocation2 + $0x124] ss:$28 sps:$4 sm:$0xff]   ;;  %v4823_v32 = vld [vmem:[#allocation2 + $0x1f8] ss:$28 sps:$4 sm:$0xff]   ;;  %v5477_v4 = vmov 0  }
  0x42   :  { %1051 = vmatprep.subr.bf16.mxu0 %v4803_v6  ;;  %1131 = vmatprep.subr.bf16.mxu1 %v4839_v17  ;;  %v5569_v29 = vpack.c.bf16 %v75_v26, %v75_v26  ;;  %v4859_v33 = vld [vmem:[#allocation2 + $0x120] ss:$28 sps:$4 sm:$0xff]   ;;  %v4824_v35 = vld [vmem:[#allocation2 + $0x234] ss:$28 sps:$4 sm:$0xff]   ;;  %v4830_v39 = vld [vmem:[#allocation2 + $0x26c] ss:$28 sps:$4 sm:$0xff]  }
  0x43   :  { %v4863_v34 = vld [vmem:[#allocation2 + $0x15c] ss:$28 sps:$4 sm:$0xff]   ;;  %v4826_v36 = vld [vmem:[#allocation2 + $0x230] ss:$28 sps:$4 sm:$0xff]   ;;  %v4832_v41 = vld [vmem:[#allocation2 + $0x268] ss:$28 sps:$4 sm:$0xff]  }
  0x44   :  { %1077 = vmatprep.mubr.bf16.mxu0 %v5569_v29  ;;  %1159 = vmatprep.mubr.bf16.mxu1 %v5569_v29  ;;  %v4865_v37 = vld [vmem:[#allocation2 + $0x158] ss:$28 sps:$4 sm:$0xff]   ;;  %v4871_v40 = vld [vmem:[#allocation2 + $0x190] ss:$28 sps:$4 sm:$0xff]   ;;  %v4836_v43 = vld [vmem:[#allocation2 + $0x2a4] ss:$28 sps:$4 sm:$0xff]  }
  0x45   :  { %1052 = vmatpush1.bf16.msra.mxu0 %v4805_v7  ;;  %1132 = vmatpush1.bf16.msra.mxu1 %v4841_v18  ;;  %v4869_v38 = vld [vmem:[#allocation2 + $0x194] ss:$28 sps:$4 sm:$0xff]   ;;  %v4875_v42 = vld [vmem:[#allocation2 + $0x1cc] ss:$28 sps:$4 sm:$0xff]   ;;  %v4838_v45 = vld [vmem:[#allocation2 + $0x2a0] ss:$28 sps:$4 sm:$0xff]  }
  0x46   :  { %1053 = vmatprep.subr.bf16.mxu0 %v4806_v8  ;;  %1133 = vmatprep.subr.bf16.mxu1 %v4845_v20  ;;  %v4877_v44 = vld [vmem:[#allocation2 + $0x1c8] ss:$28 sps:$4 sm:$0xff]   ;;  %v4842_v47 = vld [vmem:[#allocation2 + $0x2dc] ss:$28 sps:$4 sm:$0xff]   ;;  %v4848_v51 = vld [vmem:[#allocation2 + $0x314] ss:$28 sps:$4 sm:$0xff]  }
  0x47   :  { %v4881_v46 = vld [vmem:[#allocation2 + $0x204] ss:$28 sps:$4 sm:$0xff]   ;;  %v4844_v49 = vld [vmem:[#allocation2 + $0x2d8] ss:$28 sps:$4 sm:$0xff]   ;;  %v4850_v53 = vld [vmem:[#allocation2 + $0x310] ss:$28 sps:$4 sm:$0xff]  }
  0x48   :  { %v4883_v48 = vld [vmem:[#allocation2 + $0x200] ss:$28 sps:$4 sm:$0xff]   ;;  %v4889_v52 = vld [vmem:[#allocation2 + $0x238] ss:$28 sps:$4 sm:$0xff]   ;;  %v4854_v55 = vld [vmem:[#allocation2 + $0x34c] ss:$28 sps:$4 sm:$0xff]  }
  0x49   :  { %1054 = vmatpush1.bf16.msra.mxu0 %v4808_v9  ;;  %1134 = vmatpush1.bf16.msra.mxu1 %v4847_v22  ;;  %v4887_v50 = vld [vmem:[#allocation2 + $0x23c] ss:$28 sps:$4 sm:$0xff]   ;;  %v4890_v54 = vld [vmem:[#allocation2 + $0x274] ss:$28 sps:$4 sm:$0xff]   ;;  %v4856_v56 = vld [vmem:[#allocation2 + $0x348] ss:$28 sps:$4 sm:$0xff]  }
  0x4a   :  { %1055 = vmatprep.subr.bf16.mxu0 %v4809_v12  ;;  %1135 = vmatprep.subr.bf16.mxu1 %v4851_v24  ;;  %v4892_v57 = vld [vmem:[#allocation2 + $0x270] ss:$28 sps:$4 sm:$0xff]   ;;  %v74_v58 = vld [vmem:[%s5761_s0] sm:$0xff]  ;;  %v4868_v0 = vld [vmem:[#allocation2 + $0x3bc] ss:$28 sps:$4 sm:$0xff]   ;;  %vm1041_vm0 = vcmask 654336  }
  0x4b   :  { %v4893_v59 = vld [vmem:[#allocation2 + $0x2ac] ss:$28 sps:$4 sm:$0xff]   ;;  %v4862_v60 = vld [vmem:[#allocation2 + $0x384] ss:$28 sps:$4 sm:$0xff]   ;;  %v5576_v61 = vpack.c.bf16 %v74_v58, %v74_v58  ;;  %v4866_v3 = vld [vmem:[#allocation2 + $0x3b8] ss:$28 sps:$4 sm:$0xff]  }
  0x4c   :  { %v4895_v62 = vld [vmem:[#allocation2 + $0x2a8] ss:$28 sps:$4 sm:$0xff]   ;;  %v4860_v63 = vld [vmem:[#allocation2 + $0x380] ss:$28 sps:$4 sm:$0xff]   ;;  %v4874_v6 = vld [vmem:[#allocation2 + $0x3f4] ss:$28 sps:$4 sm:$0xff]  }
  0x4d   :  { %1056 = vmatpush1.bf16.msra.mxu0 %v4811_v15  ;;  %1136 = vmatpush1.bf16.msra.mxu1 %v4853_v28  ;;  %v4896_v1 = vld [vmem:[#allocation2 + $0x2e4] ss:$28 sps:$4 sm:$0xff]   ;;  %v4899_v5 = vld [vmem:[#allocation2 + $0x31c] ss:$28 sps:$4 sm:$0xff]   ;;  %v4872_v8 = vld [vmem:[#allocation2 + $0x3f0] ss:$28 sps:$4 sm:$0xff]  }
  0x4e   :  { %1057 = vmatprep.subr.bf16.mxu0 %v4812_v16  ;;  %1137 = vmatprep.subr.bf16.mxu1 %v4857_v30  ;;  %v4898_v2 = vld [vmem:[#allocation2 + $0x2e0] ss:$28 sps:$4 sm:$0xff]   ;;  %v4901_v7 = vld [vmem:[#allocation2 + $0x318] ss:$28 sps:$4 sm:$0xff]   ;;  %v4880_v10 = vld [vmem:[#allocation2 + $0x42c] ss:$28 sps:$4 sm:$0xff]  }
  0x4f   :  { %v4902_v9 = vld [vmem:[#allocation2 + $0x354] ss:$28 sps:$4 sm:$0xff]   ;;  %v4878_v12 = vld [vmem:[#allocation2 + $0x428] ss:$28 sps:$4 sm:$0xff]   ;;  %v4884_v15 = vld [vmem:[#allocation2 + $0x460] ss:$28 sps:$4 sm:$0xff]  }
  0x50   :  { %v4904_v11 = vld [vmem:[#allocation2 + $0x350] ss:$28 sps:$4 sm:$0xff]   ;;  %v4886_v14 = vld [vmem:[#allocation2 + $0x464] ss:$28 sps:$4 sm:$0xff]   ;;  %v4917_v26 = vld [vmem:[#allocation2 + $0x3f8] ss:$28 sps:$4 sm:$0xff]  }
  0x51   :  { %1058 = vmatpush1.bf16.msra.mxu0 %v4814_v19  ;;  %1138 = vmatpush1.bf16.msra.mxu1 %v4859_v33  ;;  %v4907_v13 = vld [vmem:[#allocation2 + $0x38c] ss:$28 sps:$4 sm:$0xff]   ;;  %v76_v16 = vld [vmem:[%s5761_s0 + $0x10] sm:$0xff]  ;;  %v4913_v18 = vld [vmem:[#allocation2 + $0x3c4] ss:$28 sps:$4 sm:$0xff]   ;;  %vm5479_vm1 = vmmov 0  }
  0x52   :  { %1059 = vmatprep.subr.bf16.mxu0 %v4815_v21  ;;  %1139 = vmatprep.subr.bf16.mxu1 %v4863_v34  ;;  %v4905_v17 = vld [vmem:[#allocation2 + $0x388] ss:$28 sps:$4 sm:$0xff]   ;;  %v4910_v19 = vld [vmem:[#allocation2 + $0x14] ss:$28 sps:$4 sm:$0xff]   ;;  %v5584_v21 = vpack.c.bf16 %v76_v16, %v76_v16  ;;  %v4911_v22 = vld [vmem:[#allocation2 + $0x3c0] ss:$28 sps:$4 sm:$0xff]  }
  0x53   :  { %v4908_v20 = vld [vmem:[#allocation2 + $0x10] ss:$28 sps:$4 sm:$0xff]   ;;  %v4922_v28 = vld [vmem:[#allocation2 + $0x84] ss:$28 sps:$4 sm:$0xff]   ;;  %v4928_v33 = vld [vmem:[#allocation2 + $0xbc] ss:$28 sps:$4 sm:$0xff]  }
  0x54   :  { %v4916_v24 = vld [vmem:[#allocation2 + $0x4c] ss:$28 sps:$4 sm:$0xff]   ;;  %v4920_v30 = vld [vmem:[#allocation2 + $0x80] ss:$28 sps:$4 sm:$0xff]   ;;  %vm3000_vm2 = vcmask 1043456   ;;  %vm2996_vm3 = vcmask 195584  }
  0x55   :  { %1060 = vmatpush1.bf16.msra.mxu0 %v4817_v23  ;;  %1140 = vmatpush1.bf16.msra.mxu1 %v4865_v37  ;;  %v4919_v23 = vld [vmem:[#allocation2 + $0x3fc] ss:$28 sps:$4 sm:$0xff]   ;;  %v4929_v34 = vld [vmem:[#allocation2 + $0x468] ss:$28 sps:$4 sm:$0xff]   ;;  %v4934_v37 = vld [vmem:[#allocation2 + $0xf4] ss:$28 sps:$4 sm:$0xff]  }
  0x56   :  { %1061 = vmatprep.subr.bf16.mxu0 %v4818_v25  ;;  %1141 = vmatprep.subr.bf16.mxu1 %v4869_v38  ;;  %v4914_v25 = vld [vmem:[#allocation2 + $0x48] ss:$28 sps:$4 sm:$0xff]   ;;  %v4932_v38 = vld [vmem:[#allocation2 + $0xf0] ss:$28 sps:$4 sm:$0xff]   ;;  %v5002_v16 = vld [vmem:[#allocation2 + $0x440] ss:$28 sps:$4 sm:$0xff]  }
  0x57   :  { %v4988_v58 = vld [vmem:[#allocation2 + $0x130] ss:$28 sps:$4 sm:$0xff]   ;;  %vm3821_vm4 = vcmask 719872  }
  0x59   :  { %1062 = vmatpush1.bf16.msra.mxu0 %v4820_v27  ;;  %1142 = vmatpush1.bf16.msra.mxu1 %v4871_v40  ;;  %v4925_v27 = vld [vmem:[#allocation2 + $0x434] ss:$28 sps:$4 sm:$0xff]  }
  0x5a   :  { %1063 = vmatprep.subr.bf16.mxu0 %v4821_v31  ;;  %1143 = vmatprep.subr.bf16.mxu1 %v4875_v42  ;;  %v4923_v31 = vld [vmem:[#allocation2 + $0x430] ss:$28 sps:$4 sm:$0xff]   ;;  %v4935_v42 = vld [vmem:[#allocation2 + $0x128] ss:$28 sps:$4 sm:$0xff]  }
  0x5b   :  { %v4967_v40 = vld [vmem:[#allocation2 + $0x210] ss:$28 sps:$4 sm:$0xff]  }
  0x5d   :  { %1064 = vmatpush1.bf16.msra.mxu0 %v4823_v32  ;;  %1144 = vmatpush1.bf16.msra.mxu1 %v4877_v44  ;;  %v4931_v32 = vld [vmem:[#allocation2 + $0x46c] ss:$28 sps:$4 sm:$0xff]  }
  0x5e   :  { %1065 = vmatprep.subr.bf16.mxu0 %v4824_v35  ;;  %1145 = vmatprep.subr.bf16.mxu1 %v4881_v46  ;;  %v4926_v35 = vld [vmem:[#allocation2 + $0xb8] ss:$28 sps:$4 sm:$0xff]   ;;  %v4972_v44 = vld [vmem:[#allocation2 + $0x248] ss:$28 sps:$4 sm:$0xff]   ;;  %v4938_v46 = vld [vmem:[#allocation2 + $0x160] ss:$28 sps:$4 sm:$0xff]  }
  0x61   :  { %1066 = vmatpush1.bf16.msra.mxu0 %v4826_v36  ;;  %1146 = vmatpush1.bf16.msra.mxu1 %v4883_v48  ;;  %v4962_v36 = vld [vmem:[#allocation2 + $0x1d8] ss:$28 sps:$4 sm:$0xff]   ;;  %v4977_v48 = vld [vmem:[#allocation2 + $0x280] ss:$28 sps:$4 sm:$0xff]  }
  0x62   :  { %1067 = vmatprep.subr.bf16.mxu0 %v4830_v39  ;;  %1147 = vmatprep.subr.bf16.mxu1 %v4887_v50  ;;  %v4963_v39 = vld [vmem:[#allocation2 + $0x18] ss:$28 sps:$4 sm:$0xff]  }
  0x63   :  { %v4941_v50 = vld [vmem:[#allocation2 + $0x198] ss:$28 sps:$4 sm:$0xff]  }
  0x65   :  { %1068 = vmatpush1.bf16.msra.mxu0 %v4832_v41  ;;  %1148 = vmatpush1.bf16.msra.mxu1 %v4889_v52  ;;  %v4937_v41 = vld [vmem:[#allocation2 + $0x12c] ss:$28 sps:$4 sm:$0xff]   ;;  %v4982_v52 = vld [vmem:[#allocation2 + $0x2b8] ss:$28 sps:$4 sm:$0xff]  }
  0x66   :  { %1069 = vmatprep.subr.bf16.mxu0 %v4836_v43  ;;  %1149 = vmatprep.subr.bf16.mxu1 %v4890_v54  ;;  %v4968_v43 = vld [vmem:[#allocation2 + $0x50] ss:$28 sps:$4 sm:$0xff]   ;;  %v4983_v54 = vld [vmem:[#allocation2 + $0xf8] ss:$28 sps:$4 sm:$0xff]  }
  0x69   :  { %1070 = vmatpush1.bf16.msra.mxu0 %v4838_v45  ;;  %1150 = vmatpush1.bf16.msra.mxu1 %v4892_v57  ;;  %v4940_v45 = vld [vmem:[#allocation2 + $0x164] ss:$28 sps:$4 sm:$0xff]  }
  0x6a   :  { %1071 = vmatprep.subr.bf16.mxu0 %v4842_v47  ;;  %1151 = vmatprep.subr.bf16.mxu1 %v4893_v59  ;;  %v4973_v47 = vld [vmem:[#allocation2 + $0x88] ss:$28 sps:$4 sm:$0xff]  }
  0x6b   :  { %v4947_v57 = vld [vmem:[#allocation2 + $0x208] ss:$28 sps:$4 sm:$0xff]  }
  0x6c   :  { %v4992_v59 = vld [vmem:[#allocation2 + $0x328] ss:$28 sps:$4 sm:$0xff]  }
  0x6d   :  { %1072 = vmatpush1.bf16.msra.mxu0 %v4844_v49  ;;  %1152 = vmatpush1.bf16.msra.mxu1 %v4895_v62  ;;  %v4943_v49 = vld [vmem:[#allocation2 + $0x19c] ss:$28 sps:$4 sm:$0xff]  }
  0x6e   :  { %1073 = vmatprep.subr.bf16.mxu0 %v4848_v51  ;;  %1153 = vmatprep.subr.bf16.mxu1 %v4896_v1  ;;  %v4978_v51 = vld [vmem:[#allocation2 + $0xc0] ss:$28 sps:$4 sm:$0xff]  }
  0x6f   :  { %v4950_v62 = vld [vmem:[#allocation2 + $0x240] ss:$28 sps:$4 sm:$0xff]  }
  0x70   :  { %v4955_v1 = vld [vmem:[#allocation2 + $0x27c] ss:$28 sps:$4 sm:$0xff]  }
  0x71   :  { %1074 = vmatpush1.bf16.msra.mxu0 %v4850_v53  ;;  %1154 = vmatpush1.bf16.msra.mxu1 %v4898_v2  ;;  %v4944_v53 = vld [vmem:[#allocation2 + $0x1d0] ss:$28 sps:$4 sm:$0xff]   ;;  %v4998_v2 = vld [vmem:[#allocation2 + $0x1a0] ss:$28 sps:$4 sm:$0xff]  }
  0x72   :  { %1075 = vmatprep.subr.bf16.mxu0 %v4854_v55  ;;  %1155 = vmatprep.subr.bf16.mxu1 %v4899_v5  ;;  %v4987_v55 = vld [vmem:[#allocation2 + $0x2f0] ss:$28 sps:$4 sm:$0xff]  }
  0x73   :  { %v4958_v5 = vld [vmem:[#allocation2 + $0x2b4] ss:$28 sps:$4 sm:$0xff]  }
  0x75   :  { %1076 = vmatpush1.bf16.msra.mxu0 %v4856_v56  ;;  %1156 = vmatpush1.bf16.msra.mxu1 %v4901_v7  ;;  %v4949_v56 = vld [vmem:[#allocation2 + $0x20c] ss:$28 sps:$4 sm:$0xff]  }
  0x76   :  { %1086 = vmatprep.subr.bf16.mxu0 %v4862_v60  ;;  %1157 = vmatprep.subr.bf16.mxu1 %v4902_v9  ;;  %v4952_v60 = vld [vmem:[#allocation2 + $0x244] ss:$28 sps:$4 sm:$0xff]   ;;  %v4956_v7 = vld [vmem:[#allocation2 + $0x2b0] ss:$28 sps:$4 sm:$0xff]  }
  0x77   :  { %v4961_v9 = vld [vmem:[#allocation2 + $0x2ec] ss:$28 sps:$4 sm:$0xff]  }
  0x78   :  { %1078 = vmatmul.mubr.bf16.vlgmr.msra.gmra.mrb[0].mxu0 %v5576_v61 }
  0x79   :  { %1087 = vmatpush1.bf16.msra.mxu0 %v4860_v63  ;;  %1118 = vmatprep.mubr.bf16.mxu0 %v5477_v4  ;;  %v4993_v63 = vld [vmem:[#allocation2 + $0x168] ss:$28 sps:$4 sm:$0xff]  }
  0x7a   :  { %1088 = vmatprep.subr.bf16.mxu0 %v4868_v0  ;;  %1158 = vmatpush1.bf16.msra.mxu1 %v4904_v11  ;;  %v4997_v0 = vld [vmem:[#allocation2 + $0x360] ss:$28 sps:$4 sm:$0xff]   ;;  %v4959_v11 = vld [vmem:[#allocation2 + $0x2e8] ss:$28 sps:$4 sm:$0xff]  }
  0x7b   :  { %1168 = vmatprep.subr.bf16.mxu1 %v4907_v13  ;;  %v5001_v13 = vld [vmem:[#allocation2 + $0x408] ss:$28 sps:$4 sm:$0xff]  }
  0x7d   :  { %1089 = vmatpush1.bf16.msra.mxu0 %v4866_v3  ;;  %1160 = vmatmul.mubr.bf16.vlgmr.msra.gmra.mrb[0].mxu1 %v5576_v61  ;;  %v4953_v3 = vld [vmem:[#allocation2 + $0x278] ss:$28 sps:$4 sm:$0xff]  }
  0x7e   :  { %1090 = vmatprep.subr.bf16.mxu0 %v4874_v6  ;;  %1169 = vmatpush1.bf16.msra.mxu1 %v4905_v17  ;;  %v4999_v6 = vld [vmem:[#allocation2 + $0x398] ss:$28 sps:$4 sm:$0xff]  }
  0x7f   :  { %1200 = vmatprep.mubr.bf16.mxu1 %v5477_v4  ;;  %1170 = vmatprep.subr.bf16.mxu1 %v4913_v18  ;;  %v4969_v17 = vld [vmem:[#allocation2 + $0x358] ss:$28 sps:$4 sm:$0xff]  }
  0x80   :  { %v4976_v18 = vld [vmem:[#allocation2 + $0x394] ss:$28 sps:$4 sm:$0xff]  }
  0x81   :  { %1091 = vmatpush1.bf16.msra.mxu0 %v4872_v8  ;;  %v5478_v8 = vmov 0.0  }
  0x82   :  { %1092 = vmatprep.subr.bf16.mxu0 %v4880_v10  ;;  %1171 = vmatpush1.bf16.msra.mxu1 %v4911_v22  ;;  %v5000_v10 = vld [vmem:[#allocation2 + $0x3d0] ss:$28 sps:$4 sm:$0xff]  }
  0x83   :  { %1172 = vmatprep.subr.bf16.mxu1 %v4919_v23  ;;  %v4981_v22 = vld [vmem:[#allocation2 + $0x3cc] ss:$28 sps:$4 sm:$0xff]   ;;  %v5006_v23 = vld [vmem:[#allocation4 + $0x4] ss:$20 sps:$4 sm:$0xff]  }
  0x85   :  { %1093 = vmatpush1.bf16.msra.mxu0 %v4878_v12  ;;  %v4966_v12 = vld [vmem:[#allocation2 + $0x324] ss:$28 sps:$4 sm:$0xff]  }
  0x86   :  { %1094 = vmatprep.subr.bf16.mxu0 %v4886_v14  ;;  %1173 = vmatpush1.bf16.msra.mxu1 %v4917_v26  ;;  %v4964_v14 = vld [vmem:[#allocation2 + $0x320] ss:$28 sps:$4 sm:$0xff]   ;;  %v5012_v26 = vld [vmem:[#allocation4 + $0x2c] ss:$20 sps:$4 sm:$0xff]  }
  0x87   :  { %1174 = vmatprep.subr.bf16.mxu1 %v4925_v27  ;;  %v4986_v27 = vld [vmem:[#allocation2 + $0x404] ss:$28 sps:$4 sm:$0xff]  }
  0x89   :  { %1095 = vmatpush1.bf16.msra.mxu0 %v4884_v15  ;;  %v4971_v15 = vld [vmem:[#allocation2 + $0x35c] ss:$28 sps:$4 sm:$0xff]  }
  0x8a   :  { %1209 = vmatprep.subr.bf16.mxu0 %v4910_v19  ;;  %1175 = vmatpush1.bf16.msra.mxu1 %v4923_v31  ;;  %v5003_v19 = vld [vmem:[#allocation2 + $0x478] ss:$28 sps:$4 sm:$0xff]   ;;  %v5018_v31 = vld [vmem:[#allocation4 + $0x54] ss:$20 sps:$4 sm:$0xff]  }
  0x8b   :  { %1176 = vmatprep.subr.bf16.mxu1 %v4931_v32  ;;  %v4991_v32 = vld [vmem:[#allocation2 + $0x43c] ss:$28 sps:$4 sm:$0xff]  }
  0x8c   :  { %4215 = vmatmul.mubr.msk.bf16.vlgmr.msra.gmra.mrb[0].mxu0 %vm1041_vm0, %v5584_v21 }
  0x8d   :  { %1210 = vmatpush1.bf16.msra.mxu0 %v4908_v20  ;;  %1241 = vmatprep.mubr.bf16.mxu0 %v5569_v29  ;;  %v4974_v20 = vld [vmem:[#allocation2 + $0x390] ss:$28 sps:$4 sm:$0xff]  }
  0x8e   :  { %1211 = vmatprep.subr.bf16.mxu0 %v4916_v24  ;;  %1177 = vmatpush1.bf16.msra.mxu1 %v4929_v34  ;;  %v5004_v24 = vld [vmem:[#allocation4] ss:$20 sps:$4 sm:$0xff]   ;;  %v5024_v34 = vld [vmem:[#allocation4 + $0x7c] ss:$20 sps:$4 sm:$0xff]  }
  0x8f   :  { %4523 = vmatprep.subr.bf16.mxu1 %v4962_v36  ;;  %v5022_v36 = vld [vmem:[#allocation4 + $0x78] ss:$20 sps:$4 sm:$0xff]  }
  0x91   :  { %1212 = vmatpush1.bf16.msra.mxu0 %v4914_v25  ;;  %4216 = vmatmul.mubr.msk.bf16.vlgmr.msra.gmra.mrb[0].mxu1 %vm1041_vm0, %v5584_v21  ;;  %v4979_v25 = vld [vmem:[#allocation2 + $0x3c8] ss:$28 sps:$4 sm:$0xff]  }
  0x92   :  { %1213 = vmatprep.subr.bf16.mxu0 %v4922_v28  ;;  %4524 = vmatpush3.bf16.msra.mxu1 %v4963_v39  ;;  %v5010_v28 = vld [vmem:[#allocation4 + $0x28] ss:$20 sps:$4 sm:$0xff]   ;;  %v5009_v39 = vld [vmem:[#allocation4 + $0xc] ss:$20 sps:$4 sm:$0xff]  }
  0x93   :  { %1323 = vmatprep.mubr.bf16.mxu1 %v5569_v29  ;;  %4525 = vmatprep.subr.bf16.mxu1 %v4967_v40  ;;  %v4946_v29 = vld [vmem:[#allocation2 + $0x1d4] ss:$28 sps:$4 sm:$0xff]   ;;  %v5028_v40 = vld [vmem:[#allocation4 + $0xa0] ss:$20 sps:$4 sm:$0xff]  }
  0x95   :  { %1214 = vmatpush1.bf16.msra.mxu0 %v4920_v30  ;;  %v4984_v30 = vld [vmem:[#allocation2 + $0x400] ss:$28 sps:$4 sm:$0xff]  }
  0x96   :  { %1215 = vmatprep.subr.bf16.mxu0 %v4928_v33  ;;  %4526 = vmatpush3.bf16.msra.mxu1 %v4968_v43  ;;  %v5016_v33 = vld [vmem:[#allocation4 + $0x50] ss:$20 sps:$4 sm:$0xff]   ;;  %v5015_v43 = vld [vmem:[#allocation4 + $0x34] ss:$20 sps:$4 sm:$0xff]  }
  0x97   :  { %4527 = vmatprep.subr.bf16.mxu1 %v4972_v44  ;;  %v5034_v44 = vld [vmem:[#allocation4 + $0xc8] ss:$20 sps:$4 sm:$0xff]  }
  0x99   :  { %1216 = vmatpush1.bf16.msra.mxu0 %v4926_v35  ;;  %v4996_v35 = vld [vmem:[#allocation2 + $0x474] ss:$28 sps:$4 sm:$0xff]  }
  0x9a   :  { %1217 = vmatprep.subr.bf16.mxu0 %v4934_v37  ;;  %4528 = vmatpush3.bf16.msra.mxu1 %v4973_v47  ;;  %v4994_v37 = vld [vmem:[#allocation2 + $0x470] ss:$28 sps:$4 sm:$0xff]   ;;  %v5021_v47 = vld [vmem:[#allocation4 + $0x5c] ss:$20 sps:$4 sm:$0xff]  }
  0x9b   :  { %4529 = vmatprep.subr.bf16.mxu1 %v4977_v48  ;;  %v5040_v48 = vld [vmem:[#allocation4 + $0xf0] ss:$20 sps:$4 sm:$0xff]  }
  0x9d   :  { %1218 = vmatpush1.bf16.msra.mxu0 %v4932_v38  ;;  %v5030_v38 = vld [vmem:[#allocation4 + $0xa4] ss:$20 sps:$4 sm:$0xff]  }
  0x9e   :  { %1219 = vmatprep.subr.bf16.mxu0 %v4937_v41  ;;  %4530 = vmatpush3.bf16.msra.mxu1 %v4978_v51  ;;  %v5007_v41 = vld [vmem:[#allocation4 + $0x8] ss:$20 sps:$4 sm:$0xff]   ;;  %v5027_v51 = vld [vmem:[#allocation4 + $0x84] ss:$20 sps:$4 sm:$0xff]  }
  0x9f   :  { %4531 = vmatprep.subr.bf16.mxu1 %v4982_v52  ;;  %v5046_v52 = vld [vmem:[#allocation4 + $0x118] ss:$20 sps:$4 sm:$0xff]  }
  0xa1   :  { %1220 = vmatpush1.bf16.msra.mxu0 %v4935_v42  ;;  %v5036_v42 = vld [vmem:[#allocation4 + $0xcc] ss:$20 sps:$4 sm:$0xff]  }
  0xa2   :  { %1221 = vmatprep.subr.bf16.mxu0 %v4940_v45  ;;  %4532 = vmatpush3.bf16.msra.mxu1 %v4983_v54  ;;  %v5013_v45 = vld [vmem:[#allocation4 + $0x30] ss:$20 sps:$4 sm:$0xff]   ;;  %v5052_v54 = vld [vmem:[#allocation4 + $0x140] ss:$20 sps:$4 sm:$0xff]  }
  0xa3   :  { %4533 = vmatprep.subr.bf16.mxu1 %v4987_v55  ;;  %v5031_v55 = vld [vmem:[#allocation4 + $0xa8] ss:$20 sps:$4 sm:$0xff]  }
  0xa5   :  { %1222 = vmatpush1.bf16.msra.mxu0 %v4938_v46  ;;  %v5042_v46 = vld [vmem:[#allocation4 + $0xf4] ss:$20 sps:$4 sm:$0xff]  }
  0xa6   :  { %1223 = vmatprep.subr.bf16.mxu0 %v4943_v49  ;;  %4534 = vmatpush3.bf16.msra.mxu1 %v4988_v58  ;;  %v5019_v49 = vld [vmem:[#allocation4 + $0x58] ss:$20 sps:$4 sm:$0xff]   ;;  %v5058_v58 = vld [vmem:[#allocation4 + $0x168] ss:$20 sps:$4 sm:$0xff]  }
  0xa7   :  { %4535 = vmatprep.subr.bf16.mxu1 %v4992_v59  ;;  %v5037_v59 = vld [vmem:[#allocation4 + $0xd0] ss:$20 sps:$4 sm:$0xff]  }
  0xa9   :  { %1224 = vmatpush1.bf16.msra.mxu0 %v4941_v50  ;;  %v5048_v50 = vld [vmem:[#allocation4 + $0x11c] ss:$20 sps:$4 sm:$0xff]  }
  0xaa   :  { %1225 = vmatprep.subr.bf16.mxu0 %v4946_v29  ;;  %4536 = vmatpush3.bf16.msra.mxu1 %v4993_v63  ;;  %v5025_v29 = vld [vmem:[#allocation4 + $0x80] ss:$20 sps:$4 sm:$0xff]   ;;  %v5064_v63 = vld [vmem:[#allocation4 + $0x190] ss:$20 sps:$4 sm:$0xff]  }
  0xab   :  { %4537 = vmatprep.subr.bf16.mxu1 %v4997_v0  ;;  %v5043_v0 = vld [vmem:[#allocation4 + $0xf8] ss:$20 sps:$4 sm:$0xff]  }
  0xad   :  { %1226 = vmatpush1.bf16.msra.mxu0 %v4944_v53  ;;  %v5033_v53 = vld [vmem:[#allocation4 + $0xac] ss:$20 sps:$4 sm:$0xff]  }
  0xae   :  { %1227 = vmatprep.subr.bf16.mxu0 %v4949_v56  ;;  %4538 = vmatpush3.bf16.msra.mxu1 %v4998_v2  ;;  %v5060_v56 = vld [vmem:[#allocation4 + $0x16c] ss:$20 sps:$4 sm:$0xff]   ;;  %v5051_v2 = vld [vmem:[#allocation4 + $0x124] ss:$20 sps:$4 sm:$0xff]  }
  0xaf   :  { %4680 = vmatprep.subr.bf16.mxu1 %v5478_v8 }
  0xb1   :  { %1228 = vmatpush1.bf16.msra.mxu0 %v4947_v57  ;;  %1324 = vmatmul.mubr.bf16.vlgmr.msra.gmra.mrb[4].mxu1 %v5576_v61  ;;  %v5039_v57 = vld [vmem:[#allocation4 + $0xd4] ss:$20 sps:$4 sm:$0xff]  }
  0xb2   :  { %1229 = vmatprep.subr.bf16.mxu0 %v4952_v60  ;;  %4681 = vmatpush3.bf16.msra.mxu1 %v4999_v6  ;;  %v5066_v60 = vld [vmem:[#allocation4 + $0x194] ss:$20 sps:$4 sm:$0xff]   ;;  %v5078_v6 = vld [vmem:[#allocation4 + $0x1e4] ss:$20 sps:$4 sm:$0xff]  }
  0xb3   :  { %4690 = vmatprep.mubr.msk.bf16.mxu1 %vm5479_vm1, %v5478_v8  ;;  %4682 = vmatprep.subr.bf16.mxu1 %v5478_v8 }
  0xb5   :  { %1230 = vmatpush1.bf16.msra.mxu0 %v4950_v62  ;;  %v5045_v62 = vld [vmem:[#allocation4 + $0xfc] ss:$20 sps:$4 sm:$0xff]  }
  0xb6   :  { %1231 = vmatprep.subr.bf16.mxu0 %v4955_v1  ;;  %4683 = vmatpush3.bf16.msra.mxu1 %v5000_v10  ;;  %v5072_v1 = vld [vmem:[#allocation4 + $0x1bc] ss:$20 sps:$4 sm:$0xff]  }
  0xb7   :  { %4684 = vmatprep.subr.bf16.mxu1 %v5478_v8  ;;  %v5055_v10 = vld [vmem:[#allocation4 + $0x148] ss:$20 sps:$4 sm:$0xff]  }
  0xb9   :  { %1232 = vmatpush1.bf16.msra.mxu0 %v4953_v3  ;;  %v5070_v3 = vld [vmem:[#allocation4 + $0x1b8] ss:$20 sps:$4 sm:$0xff]  }
  0xba   :  { %1233 = vmatprep.subr.bf16.mxu0 %v4958_v5  ;;  %4685 = vmatpush3.bf16.msra.mxu1 %v5001_v13  ;;  %v5049_v5 = vld [vmem:[#allocation4 + $0x120] ss:$20 sps:$4 sm:$0xff]   ;;  %v5082_v13 = vld [vmem:[#allocation4 + $0x208] ss:$20 sps:$4 sm:$0xff]  }
  0xbb   :  { %4686 = vmatprep.subr.bf16.mxu1 %v5478_v8 }
  0xbd   :  { %1234 = vmatpush1.bf16.msra.mxu0 %v4956_v7  ;;  %v5057_v7 = vld [vmem:[#allocation4 + $0x14c] ss:$20 sps:$4 sm:$0xff]  }
  0xbe   :  { %1235 = vmatprep.subr.bf16.mxu0 %v4961_v9  ;;  %4687 = vmatpush3.bf16.msra.mxu1 %v5002_v16  ;;  %v5076_v9 = vld [vmem:[#allocation4 + $0x1e0] ss:$20 sps:$4 sm:$0xff]   ;;  %v5069_v16 = vld [vmem:[#allocation4 + $0x19c] ss:$20 sps:$4 sm:$0xff]  }
  0xbf   :  { %4688 = vmatprep.subr.bf16.mxu1 %v5478_v8 }
  0xc1   :  { %1236 = vmatpush1.bf16.msra.mxu0 %v4959_v11  ;;  %v5084_v11 = vld [vmem:[#allocation4 + $0x20c] ss:$20 sps:$4 sm:$0xff]  }
  0xc2   :  { %1237 = vmatprep.subr.bf16.mxu0 %v4966_v12  ;;  %4689 = vmatpush3.bf16.msra.mxu1 %v5003_v19  ;;  %v5063_v12 = vld [vmem:[#allocation4 + $0x174] ss:$20 sps:$4 sm:$0xff]   ;;  %v5096_v19 = vld [vmem:[#allocation4 + $0x25c] ss:$20 sps:$4 sm:$0xff]  }
  0xc3   :  { %3016 = vmatprep.subr.bf16.mxu1 %v5006_v23  ;;  %v5073_v23 = vld [vmem:[#allocation4 + $0x1c0] ss:$20 sps:$4 sm:$0xff]  }
  0xc5   :  { %1238 = vmatpush1.bf16.msra.mxu0 %v4964_v14  ;;  %4691 = vmatmul.mubr.msk.bf16.vlgmr.msra.gmra.mrb[8].mxu1 %vm1041_vm0, %v5584_v21  ;;  %v5061_v14 = vld [vmem:[#allocation4 + $0x170] ss:$20 sps:$4 sm:$0xff]  }
  0xc6   :  { %1239 = vmatprep.subr.bf16.mxu0 %v4971_v15  ;;  %3017 = vmatpush1.bf16.msra.mxu1 %v5004_v24  ;;  %v5090_v15 = vld [vmem:[#allocation4 + $0x234] ss:$20 sps:$4 sm:$0xff]   ;;  %v5102_v24 = vld [vmem:[#allocation4 + $0x284] ss:$20 sps:$4 sm:$0xff]  }
  0xc7   :  { %3018 = vmatprep.subr.bf16.mxu1 %v5012_v26  ;;  %v5079_v26 = vld [vmem:[#allocation4 + $0x1e8] ss:$20 sps:$4 sm:$0xff]  }
  0xc9   :  { %1240 = vmatpush1.bf16.msra.mxu0 %v4969_v17  ;;  %v5088_v17 = vld [vmem:[#allocation4 + $0x230] ss:$20 sps:$4 sm:$0xff]  }
  0xca   :  { %1250 = vmatprep.subr.bf16.mxu0 %v4976_v18  ;;  %3019 = vmatpush1.bf16.msra.mxu1 %v5010_v28  ;;  %v5067_v18 = vld [vmem:[#allocation4 + $0x198] ss:$20 sps:$4 sm:$0xff]   ;;  %v5085_v28 = vld [vmem:[#allocation4 + $0x210] ss:$20 sps:$4 sm:$0xff]  }
  0xcb   :  { %3020 = vmatprep.subr.bf16.mxu1 %v5018_v31  ;;  %v5091_v31 = vld [vmem:[#allocation4 + $0x238] ss:$20 sps:$4 sm:$0xff]  }
  0xcc   :  { %1242 = vmatmul.mubr.bf16.vlgmr.msra.gmra.mrb[4].mxu0 %v5576_v61  ;;  %v4989_v61 = vld [vmem:[#allocation2 + $0x438] ss:$28 sps:$4 sm:$0xff]  }
  0xcd   :  { %1251 = vmatpush1.bf16.msra.mxu0 %v4974_v20  ;;  %1282 = vmatprep.mubr.bf16.mxu0 %v5477_v4  ;;  %v5075_v20 = vld [vmem:[#allocation4 + $0x1c4] ss:$20 sps:$4 sm:$0xff]  }
  0xce   :  { %1252 = vmatprep.subr.bf16.mxu0 %v4981_v22  ;;  %3021 = vmatpush1.bf16.msra.mxu1 %v5016_v33  ;;  %v5094_v22 = vld [vmem:[#allocation4 + $0x258] ss:$20 sps:$4 sm:$0xff]   ;;  %v5097_v33 = vld [vmem:[#allocation4 + $0x260] ss:$20 sps:$4 sm:$0xff]  }
  0xcf   :  { %3022 = vmatprep.subr.bf16.mxu1 %v5024_v34  ;;  %v250_v34 = vlaneseq }
  0xd1   :  { %1253 = vmatpush1.bf16.msra.mxu0 %v4979_v25  ;;  %v5081_v25 = vld [vmem:[#allocation4 + $0x1ec] ss:$20 sps:$4 sm:$0xff]  }
  0xd2   :  { %1254 = vmatprep.subr.bf16.mxu0 %v4986_v27  ;;  %3023 = vmatpush1.bf16.msra.mxu1 %v5022_v36  ;;  %v5087_v27 = vld [vmem:[#allocation4 + $0x214] ss:$20 sps:$4 sm:$0xff]  }
  0xd3   :  { %3024 = vmatprep.subr.bf16.mxu1 %v5030_v38 }
  0xd5   :  { %1255 = vmatpush1.bf16.msra.mxu0 %v4984_v30  ;;  %v5093_v30 = vld [vmem:[#allocation4 + $0x23c] ss:$20 sps:$4 sm:$0xff]  }
  0xd6   :  { %1256 = vmatprep.subr.bf16.mxu0 %v4991_v32  ;;  %3025 = vmatpush1.bf16.msra.mxu1 %v5028_v40  ;;  %v5099_v32 = vld [vmem:[#allocation4 + $0x264] ss:$20 sps:$4 sm:$0xff]  }
  0xd7   :  { %3026 = vmatprep.subr.bf16.mxu1 %v5036_v42 }
  0xd9   :  { %1257 = vmatpush1.bf16.msra.mxu0 %v4989_v61  ;;  %v5105_v61 = vld [vmem:[#allocation4 + $0x28c] ss:$20 sps:$4 sm:$0xff]  }
  0xda   :  { %1258 = vmatprep.subr.bf16.mxu0 %v4996_v35  ;;  %3027 = vmatpush1.bf16.msra.mxu1 %v5034_v44  ;;  %v5607_v35 = vshrl.u32 %v250_v34, 7  ;;  %v5154_v34 = vld [vmem:[#allocation4 + $0x3e8] ss:$20 sps:$4 sm:$0xff]  }
  0xdb   :  { %3028 = vmatprep.subr.bf16.mxu1 %v5042_v46 }
  0xdc   :  { %v252_v36 = vsub.s32 0, %v5607_v35  ;;  %v256_v38 = vsub.s32 1, %v5607_v35 }
  0xdd   :  { %1259 = vmatpush1.bf16.msra.mxu0 %v4994_v37  ;;  %v5613_v37 = vld [vmem:[%s5763_s2] sm:$0x7f] }
  0xde   :  { %3180 = vmatprep.subr.bf16.mxu0 %v5009_v39  ;;  %3029 = vmatpush1.bf16.msra.mxu1 %v5040_v48  ;;  %v253_v39 = vrot.slane %v5613_v37, %v252_v36  ;;  %v257_v40 = vrot.slane %v5613_v37, %v256_v38 }
  0xdf   :  { %3030 = vmatprep.subr.bf16.mxu1 %v5048_v50  ;;  %v5100_v50 = vld [vmem:[#allocation4 + $0x280] ss:$20 sps:$4 sm:$0xff]  }
  0xe0   :  { %4217 = vmatmul.mubr.msk.bf16.vlgmr.msra.gmra.mrb[4].mxu0 %vm1041_vm0, %v5584_v21  ;;  %v5054_v21 = vld [vmem:[#allocation4 + $0x144] ss:$20 sps:$4 sm:$0xff]  }
  0xe1   :  { %3181 = vmatpush1.bf16.msra.mxu0 %v5007_v41 }
  0xe2   :  { %3182 = vmatprep.subr.bf16.mxu0 %v5015_v43  ;;  %3031 = vmatpush1.bf16.msra.mxu1 %v5046_v52 }
  0xe3   :  { %3032 = vmatprep.subr.bf16.mxu1 %v5054_v21  ;;  %v5111_v21 = vld [vmem:[#allocation4 + $0x2b4] ss:$20 sps:$4 sm:$0xff]  }
  0xe5   :  { %3183 = vmatpush1.bf16.msra.mxu0 %v5013_v45 }
  0xe6   :  { %3184 = vmatprep.subr.bf16.mxu0 %v5021_v47  ;;  %3033 = vmatpush1.bf16.msra.mxu1 %v5052_v54  ;;  %v5106_v54 = vld [vmem:[#allocation4 + $0x2a8] ss:$20 sps:$4 sm:$0xff]  }
  0xe7   :  { %3034 = vmatprep.subr.bf16.mxu1 %v5060_v56  ;;  %v5114_v56 = vld [vmem:[#allocation4 + $0x2d4] ss:$20 sps:$4 sm:$0xff]  }
  0xe9   :  { %3185 = vmatpush1.bf16.msra.mxu0 %v5019_v49 }
  0xea   :  { %3186 = vmatprep.subr.bf16.mxu0 %v5027_v51  ;;  %3035 = vmatpush1.bf16.msra.mxu1 %v5058_v58  ;;  %v5103_v51 = vld [vmem:[#allocation4 + $0x288] ss:$20 sps:$4 sm:$0xff]  }
  0xeb   :  { %3036 = vmatprep.subr.bf16.mxu1 %v5066_v60  ;;  %v5115_v60 = vld [vmem:[#allocation4 + $0x2d8] ss:$20 sps:$4 sm:$0xff]  }
  0xed   :  { %3187 = vmatpush1.bf16.msra.mxu0 %v5025_v29  ;;  %v5108_v29 = vld [vmem:[#allocation4 + $0x2ac] ss:$20 sps:$4 sm:$0xff]  }
  0xee   :  { %3188 = vmatprep.subr.bf16.mxu0 %v5033_v53  ;;  %3037 = vmatpush1.bf16.msra.mxu1 %v5064_v63  ;;  %v264_v53 = vsub.s32 3, %v5607_v35  ;;  %v5123_v63 = vld [vmem:[#allocation4 + $0x304] ss:$20 sps:$4 sm:$0xff]  }
  0xef   :  { %3038 = vmatprep.subr.bf16.mxu1 %v5072_v1 }
  0xf0   :  { %v265_v58 = vrot.slane %v5613_v37, %v264_v53 }
  0xf1   :  { %3189 = vmatpush1.bf16.msra.mxu0 %v5031_v55  ;;  %v5109_v55 = vld [vmem:[#allocation4 + $0x2b0] ss:$20 sps:$4 sm:$0xff]  }
  0xf2   :  { %3190 = vmatprep.subr.bf16.mxu0 %v5039_v57  ;;  %3039 = vmatpush1.bf16.msra.mxu1 %v5070_v3  ;;  %v5117_v57 = vld [vmem:[#allocation4 + $0x2dc] ss:$20 sps:$4 sm:$0xff]  }
  0xf3   :  { %3040 = vmatprep.subr.bf16.mxu1 %v5078_v6  ;;  %v5121_v6 = vld [vmem:[#allocation4 + $0x300] ss:$20 sps:$4 sm:$0xff]  }
  0xf5   :  { %3191 = vmatpush1.bf16.msra.mxu0 %v5037_v59  ;;  %v5112_v59 = vld [vmem:[#allocation4 + $0x2d0] ss:$20 sps:$4 sm:$0xff]  }
  0xf6   :  { %3192 = vmatprep.subr.bf16.mxu0 %v5045_v62  ;;  %3041 = vmatpush1.bf16.msra.mxu1 %v5076_v9  ;;  %v5120_v62 = vld [vmem:[#allocation4 + $0x2fc] ss:$20 sps:$4 sm:$0xff]   ;;  %v5126_v9 = vld [vmem:[#allocation4 + $0x324] ss:$20 sps:$4 sm:$0xff]  }
  0xf7   :  { %3042 = vmatprep.subr.bf16.mxu1 %v5084_v11 }
  0xf9   :  { %3193 = vmatpush1.bf16.msra.mxu0 %v5043_v0 }
  0xfa   :  { %3194 = vmatprep.subr.bf16.mxu0 %v5051_v2  ;;  %3043 = vmatpush1.bf16.msra.mxu1 %v5082_v13  ;;  %v5124_v13 = vld [vmem:[#allocation4 + $0x320] ss:$20 sps:$4 sm:$0xff]  }
  0xfb   :  { %3044 = vmatprep.subr.bf16.mxu1 %v5090_v15  ;;  %v5132_v15 = vld [vmem:[#allocation4 + $0x34c] ss:$20 sps:$4 sm:$0xff]  }
  0xfd   :  { %3195 = vmatpush1.bf16.msra.mxu0 %v5049_v5  ;;  %v5118_v5 = vld [vmem:[#allocation4 + $0x2f8] ss:$20 sps:$4 sm:$0xff]  }
  0xfe   :  { %3196 = vmatprep.subr.bf16.mxu0 %v5057_v7  ;;  %3045 = vmatpush1.bf16.msra.mxu1 %v5088_v17  ;;  %v5130_v17 = vld [vmem:[#allocation4 + $0x348] ss:$20 sps:$4 sm:$0xff]  }
  0xff   :  { %3046 = vmatprep.subr.bf16.mxu1 %v5096_v19  ;;  %v5138_v19 = vld [vmem:[#allocation4 + $0x374] ss:$20 sps:$4 sm:$0xff]  }
 0x101   :  { %3197 = vmatpush1.bf16.msra.mxu0 %v5055_v10  ;;  %v5129_v10 = vld [vmem:[#allocation4 + $0x32c] ss:$20 sps:$4 sm:$0xff]  }
 0x102   :  { %3198 = vmatprep.subr.bf16.mxu0 %v5063_v12  ;;  %3047 = vmatpush1.bf16.msra.mxu1 %v5094_v22  ;;  %v5136_v22 = vld [vmem:[#allocation4 + $0x370] ss:$20 sps:$4 sm:$0xff]  }
 0x103   :  { %3057 = vmatprep.subr.bf16.mxu1 %v5102_v24  ;;  %v5144_v24 = vld [vmem:[#allocation4 + $0x39c] ss:$20 sps:$4 sm:$0xff]  }
 0x105   :  { %3199 = vmatpush1.bf16.msra.mxu0 %v5061_v14  ;;  %v5127_v14 = vld [vmem:[#allocation4 + $0x328] ss:$20 sps:$4 sm:$0xff]  }
 0x106   :  { %3200 = vmatprep.subr.bf16.mxu0 %v5069_v16  ;;  %v5135_v16 = vld [vmem:[#allocation4 + $0x354] ss:$20 sps:$4 sm:$0xff]  }
 0x109   :  { %3201 = vmatpush1.bf16.msra.mxu0 %v5067_v18  ;;  %v5133_v18 = vld [vmem:[#allocation4 + $0x350] ss:$20 sps:$4 sm:$0xff]  }
 0x10a   :  { %3202 = vmatprep.subr.bf16.mxu0 %v5075_v20  ;;  %v5141_v20 = vld [vmem:[#allocation4 + $0x37c] ss:$20 sps:$4 sm:$0xff]  }
 0x10d   :  { %3203 = vmatpush1.bf16.msra.mxu0 %v5073_v23  ;;  %v5139_v23 = vld [vmem:[#allocation4 + $0x378] ss:$20 sps:$4 sm:$0xff]  }
 0x10e   :  { %3204 = vmatprep.subr.bf16.mxu0 %v5081_v25  ;;  %v5147_v25 = vld [vmem:[#allocation4 + $0x3a4] ss:$20 sps:$4 sm:$0xff]  }
 0x111   :  { %3205 = vmatpush1.bf16.msra.mxu0 %v5079_v26  ;;  %v5142_v26 = vld [vmem:[#allocation4 + $0x398] ss:$20 sps:$4 sm:$0xff]  }
 0x112   :  { %3206 = vmatprep.subr.bf16.mxu0 %v5087_v27  ;;  %v5145_v27 = vld [vmem:[#allocation4 + $0x3a0] ss:$20 sps:$4 sm:$0xff]  }
 0x115   :  { %3207 = vmatpush1.bf16.msra.mxu0 %v5085_v28  ;;  %v5150_v28 = vld [vmem:[#allocation4 + $0x3c4] ss:$20 sps:$4 sm:$0xff]  }
 0x116   :  { %3208 = vmatprep.subr.bf16.mxu0 %v5093_v30  ;;  %v5153_v30 = vld [vmem:[#allocation4 + $0x3cc] ss:$20 sps:$4 sm:$0xff]  }
 0x119   :  { %3209 = vmatpush1.bf16.msra.mxu0 %v5091_v31  ;;  %v5148_v31 = vld [vmem:[#allocation4 + $0x3c0] ss:$20 sps:$4 sm:$0xff]  }
 0x11a   :  { %3210 = vmatprep.subr.bf16.mxu0 %v5099_v32  ;;  %v5151_v32 = vld [vmem:[#allocation4 + $0x3c8] ss:$20 sps:$4 sm:$0xff]  }
 0x11d   :  { %3211 = vmatpush1.bf16.msra.mxu0 %v5097_v33  ;;  %v5156_v33 = vld [vmem:[#allocation4 + $0x3ec] ss:$20 sps:$4 sm:$0xff]  }
 0x11e   :  { %3221 = vmatprep.subr.bf16.mxu0 %v5105_v61  ;;  %v5159_v61 = vld [vmem:[#allocation4 + $0x3f4] ss:$20 sps:$4 sm:$0xff]  }
 0x15f   :  { %v1120_v41 = vpop.f32.mrb[0].mxu0 }
 0x160   :  { %v4738_v42 = vadd.f32 %v1120_v41, %v253_v39  ;;  %v1122_v43 = vpop.f32.mrb[1].mxu0  ;;  %v5157_v39 = vld [vmem:[#allocation4 + $0x3f0] ss:$20 sps:$4 sm:$0xff]  }
 0x161   :  { %v4739_v44 = vadd.f32 %v1122_v43, %v257_v40  ;;  %v1124_v45 = vpop.f32.mrb[2].mxu0  ;;  %v5162_v40 = vld [vmem:[#allocation4 + $0x414] ss:$20 sps:$4 sm:$0xff]   ;;  %v5165_v41 = vld [vmem:[#allocation4 + $0x41c] ss:$20 sps:$4 sm:$0xff]  }
 0x162   :  { %v1371_v46 = vmax.f32 %v4738_v42, 0.0  ;;  %v1125_v47 = vpop.f32.mrb[3].mxu0  ;;  %v5160_v42 = vld [vmem:[#allocation4 + $0x410] ss:$20 sps:$4 sm:$0xff]   ;;  %v5163_v43 = vld [vmem:[#allocation4 + $0x418] ss:$20 sps:$4 sm:$0xff]  }
 0x163   :  { %v1372_v48 = vmax.f32 %v4739_v44, 0.0  ;;  %v5168_v44 = vld [vmem:[#allocation4 + $0x43c] ss:$20 sps:$4 sm:$0xff]   ;;  %v5171_v45 = vld [vmem:[#allocation4 + $0x444] ss:$20 sps:$4 sm:$0xff]  }
 0x164   :  { %v5624_v52 = vpack.c.bf16 %v1371_v46, %v1371_v46  ;;  %v5634_v0 = vpop.f32.mrb[0].mxu1 }
 0x165   :  { %v5622_v49 = vpack.c.bf16 %v1372_v48, %v1372_v48  ;;  %v1204_v1 = vpop.f32.mrb[1].mxu1 }
 0x166   :  { %v4741_v2 = vadd.f32 %v1204_v1, %v265_v58  ;;  %v1206_v3 = vpop.f32.mrb[2].mxu1  ;;  %v260_v58 = vsub.s32 2, %v5607_v35  ;;  %v5181_v1 = vld [vmem:[#allocation4 + $0x490] ss:$20 sps:$4 sm:$0xff]  }
 0x167   :  { %3048 = vmatprep.mubr.bf16.mxu1 %v5622_v49  ;;  %3212 = vmatprep.mubr.bf16.mxu0 %v5622_v49  ;;  %v1207_v7 = vpop.f32.mrb[3].mxu1  ;;  %v5186_v3 = vld [vmem:[#allocation4 + $0x4b4] ss:$20 sps:$4 sm:$0xff]  }
 0x168   :  { %3049 = vmatmul.mubr.bf16.vlgmr.msra.gmra.mrb[12].mxu1 %v5624_v52  ;;  %3213 = vmatmul.mubr.bf16.vlgmr.msra.gmra.mrb[8].mxu0 %v5624_v52  ;;  %v1374_v11 = vmax.f32 %v4741_v2, 0.0  ;;  %v261_v2 = vrot.slane %v5613_v37, %v260_v58  ;;  %v5184_v7 = vld [vmem:[#allocation4 + $0x4b0] ss:$20 sps:$4 sm:$0xff]  }
 0x169   :  { %3058 = vmatpush1.bf16.msra.mxu1 %v5100_v50  ;;  %3222 = vmatpush1.bf16.msra.mxu0 %v5103_v51  ;;  %v5166_v51 = vld [vmem:[#allocation4 + $0x438] ss:$20 sps:$4 sm:$0xff]  }
 0x16a   :  { %3059 = vmatprep.subr.bf16.mxu1 %v5108_v29  ;;  %3223 = vmatprep.subr.bf16.mxu0 %v5111_v21  ;;  %v5636_v12 = vpack.c.bf16 %v1374_v11, %v1374_v11  ;;  %v5169_v29 = vld [vmem:[#allocation4 + $0x440] ss:$20 sps:$4 sm:$0xff]   ;;  %v5192_v11 = vld [vmem:[#allocation4 + $0x4dc] ss:$20 sps:$4 sm:$0xff]  }
 0x16c   :  { %3089 = vmatprep.mubr.bf16.mxu1 %v5636_v12  ;;  %3253 = vmatprep.mubr.bf16.mxu0 %v5636_v12 }
 0x16d   :  { %3060 = vmatpush1.bf16.msra.mxu1 %v5106_v54  ;;  %3224 = vmatpush1.bf16.msra.mxu0 %v5109_v55  ;;  %v5174_v54 = vld [vmem:[#allocation4 + $0x464] ss:$20 sps:$4 sm:$0xff]   ;;  %v5177_v55 = vld [vmem:[#allocation4 + $0x46c] ss:$20 sps:$4 sm:$0xff]  }
 0x16e   :  { %3061 = vmatprep.subr.bf16.mxu1 %v5114_v56  ;;  %3225 = vmatprep.subr.bf16.mxu0 %v5117_v57  ;;  %v5172_v56 = vld [vmem:[#allocation4 + $0x460] ss:$20 sps:$4 sm:$0xff]   ;;  %v5175_v57 = vld [vmem:[#allocation4 + $0x468] ss:$20 sps:$4 sm:$0xff]  }
 0x171   :  { %3062 = vmatpush1.bf16.msra.mxu1 %v5112_v59  ;;  %3226 = vmatpush1.bf16.msra.mxu0 %v5115_v60  ;;  %v5180_v59 = vld [vmem:[#allocation4 + $0x48c] ss:$20 sps:$4 sm:$0xff]   ;;  %v5183_v60 = vld [vmem:[#allocation4 + $0x494] ss:$20 sps:$4 sm:$0xff]  }
 0x172   :  { %3063 = vmatprep.subr.bf16.mxu1 %v5120_v62  ;;  %3227 = vmatprep.subr.bf16.mxu0 %v5123_v63  ;;  %v276_v62 = vsub.s32 6, %v5607_v35  ;;  %v5178_v63 = vld [vmem:[#allocation4 + $0x488] ss:$20 sps:$4 sm:$0xff]  }
 0x175   :  { %3064 = vmatpush1.bf16.msra.mxu1 %v5118_v5  ;;  %3228 = vmatpush1.bf16.msra.mxu0 %v5121_v6  ;;  %v5189_v5 = vld [vmem:[#allocation4 + $0x4bc] ss:$20 sps:$4 sm:$0xff]   ;;  %v277_v6 = vrot.slane %v5613_v37, %v276_v62 }
 0x176   :  { %3065 = vmatprep.subr.bf16.mxu1 %v5126_v9  ;;  %3229 = vmatprep.subr.bf16.mxu0 %v5129_v10  ;;  %v5187_v9 = vld [vmem:[#allocation4 + $0x4b8] ss:$20 sps:$4 sm:$0xff]   ;;  %v4740_v10 = vadd.f32 %v5634_v0, %v261_v2  ;;  %v5196_v0 = vld [vmem:[#allocation4 + $0x500] ss:$20 sps:$4 sm:$0xff]   ;;  %v5229_v62 = vld [vmem:[#allocation4 + $0x5d0] ss:$20 sps:$4 sm:$0xff]  }
 0x177   :  { %v5237_v2 = vld [vmem:[#allocation4 + $0x5fc] ss:$20 sps:$4 sm:$0xff]  }
 0x179   :  { %3066 = vmatpush1.bf16.msra.mxu1 %v5124_v13  ;;  %3230 = vmatpush1.bf16.msra.mxu0 %v5127_v14  ;;  %v5195_v13 = vld [vmem:[#allocation4 + $0x4e4] ss:$20 sps:$4 sm:$0xff]  }
 0x17a   :  { %3067 = vmatprep.subr.bf16.mxu1 %v5132_v15  ;;  %3231 = vmatprep.subr.bf16.mxu0 %v5135_v16  ;;  %v5190_v15 = vld [vmem:[#allocation4 + $0x4d8] ss:$20 sps:$4 sm:$0xff]   ;;  %v5193_v16 = vld [vmem:[#allocation4 + $0x4e0] ss:$20 sps:$4 sm:$0xff]  }
 0x17d   :  { %3068 = vmatpush1.bf16.msra.mxu1 %v5130_v17  ;;  %3232 = vmatpush1.bf16.msra.mxu0 %v5133_v18  ;;  %v1373_v17 = vmax.f32 %v4740_v10, 0.0  ;;  %v5198_v18 = vld [vmem:[#allocation4 + $0x504] ss:$20 sps:$4 sm:$0xff]   ;;  %v5241_v10 = vld [vmem:[#allocation4 + $0x620] ss:$20 sps:$4 sm:$0xff]  }
 0x17e   :  { %3069 = vmatprep.subr.bf16.mxu1 %v5138_v19  ;;  %3233 = vmatprep.subr.bf16.mxu0 %v5141_v20  ;;  %v5201_v19 = vld [vmem:[#allocation4 + $0x50c] ss:$20 sps:$4 sm:$0xff]  }
 0x181   :  { %3070 = vmatpush1.bf16.msra.mxu1 %v5136_v22  ;;  %3234 = vmatpush1.bf16.msra.mxu0 %v5139_v23 }
 0x182   :  { %3071 = vmatprep.subr.bf16.mxu1 %v5144_v24  ;;  %3235 = vmatprep.subr.bf16.mxu0 %v5147_v25  ;;  %v5199_v25 = vld [vmem:[#allocation4 + $0x508] ss:$20 sps:$4 sm:$0xff]  }
 0x184   :  { %v4539_v46 = vpop.f32.mrb[4].mxu1 }
 0x185   :  { %3072 = vmatpush1.bf16.msra.mxu1 %v5142_v26  ;;  %3236 = vmatpush1.bf16.msra.mxu0 %v5145_v27  ;;  %v4540_v47 = vpop.f32.mrb[5].mxu1  ;;  %v5649_v27 = vpack.c.bf16 %v1373_v17, %v1373_v17  ;;  %v5255_v17 = vld [vmem:[#allocation4 + $0x674] ss:$20 sps:$4 sm:$0xff]  }
 0x186   :  { %3073 = vmatprep.subr.bf16.mxu1 %v5150_v28  ;;  %3237 = vmatprep.subr.bf16.mxu0 %v5153_v30  ;;  %v4541_v48 = vadd.f32 %v4540_v47, %v4539_v46  ;;  %v4542_v50 = vpop.f32.mrb[6].mxu1  ;;  %v5204_v28 = vld [vmem:[#allocation4 + $0x52c] ss:$20 sps:$4 sm:$0xff]   ;;  %v5207_v30 = vld [vmem:[#allocation4 + $0x534] ss:$20 sps:$4 sm:$0xff]  }
 0x187   :  { %v4543_v21 = vpop.f32.mrb[7].mxu1  ;;  %v5222_v46 = vld [vmem:[#allocation4 + $0x5a4] ss:$20 sps:$4 sm:$0xff]   ;;  %v5225_v47 = vld [vmem:[#allocation4 + $0x5ac] ss:$20 sps:$4 sm:$0xff]  }
 0x188   :  { %v1326_v14 = vadd.f32 %v4541_v48, %v277_v6  ;;  %v5240_v6 = vld [vmem:[#allocation4 + $0x61c] ss:$20 sps:$4 sm:$0xff]  }
 0x189   :  { %3074 = vmatpush1.bf16.msra.mxu1 %v5148_v31  ;;  %3238 = vmatpush1.bf16.msra.mxu0 %v5151_v32  ;;  %v5202_v31 = vld [vmem:[#allocation4 + $0x528] ss:$20 sps:$4 sm:$0xff]   ;;  %v5205_v32 = vld [vmem:[#allocation4 + $0x530] ss:$20 sps:$4 sm:$0xff]  }
 0x18a   :  { %3075 = vmatprep.subr.bf16.mxu1 %v5156_v33  ;;  %3239 = vmatprep.subr.bf16.mxu0 %v5159_v61  ;;  %v5210_v33 = vld [vmem:[#allocation4 + $0x554] ss:$20 sps:$4 sm:$0xff]   ;;  %v5213_v61 = vld [vmem:[#allocation4 + $0x55c] ss:$20 sps:$4 sm:$0xff]  }
 0x18d   :  { %3076 = vmatpush1.bf16.msra.mxu1 %v5154_v34  ;;  %3240 = vmatpush1.bf16.msra.mxu0 %v5157_v39  ;;  %v5208_v34 = vld [vmem:[#allocation4 + $0x550] ss:$20 sps:$4 sm:$0xff]   ;;  %v5211_v39 = vld [vmem:[#allocation4 + $0x558] ss:$20 sps:$4 sm:$0xff]  }
 0x18e   :  { %3077 = vmatprep.subr.bf16.mxu1 %v5162_v40  ;;  %3241 = vmatprep.subr.bf16.mxu0 %v5165_v41  ;;  %v272_v40 = vsub.s32 5, %v5607_v35  ;;  %v5216_v41 = vld [vmem:[#allocation4 + $0x57c] ss:$20 sps:$4 sm:$0xff]  }
 0x191   :  { %3078 = vmatpush1.bf16.msra.mxu1 %v5160_v42  ;;  %3242 = vmatpush1.bf16.msra.mxu0 %v5163_v43  ;;  %v5219_v42 = vld [vmem:[#allocation4 + $0x584] ss:$20 sps:$4 sm:$0xff]  }
 0x192   :  { %3079 = vmatprep.subr.bf16.mxu1 %v5168_v44  ;;  %3243 = vmatprep.subr.bf16.mxu0 %v5171_v45  ;;  %v5214_v43 = vld [vmem:[#allocation4 + $0x578] ss:$20 sps:$4 sm:$0xff]   ;;  %v5217_v44 = vld [vmem:[#allocation4 + $0x580] ss:$20 sps:$4 sm:$0xff]   ;;  %v273_v45 = vrot.slane %v5613_v37, %v272_v40 }
 0x193   :  { %v5279_v40 = vld [vmem:[#allocation4 + $0x714] ss:$20 sps:$4 sm:$0xff]  }
 0x195   :  { %3080 = vmatpush1.bf16.msra.mxu1 %v5166_v51  ;;  %3244 = vmatpush1.bf16.msra.mxu0 %v5169_v29  ;;  %v5220_v51 = vld [vmem:[#allocation4 + $0x5a0] ss:$20 sps:$4 sm:$0xff]   ;;  %v5223_v29 = vld [vmem:[#allocation4 + $0x5a8] ss:$20 sps:$4 sm:$0xff]  }
 0x196   :  { %3081 = vmatprep.subr.bf16.mxu1 %v5174_v54  ;;  %3245 = vmatprep.subr.bf16.mxu0 %v5177_v55  ;;  %v5228_v55 = vld [vmem:[#allocation4 + $0x5cc] ss:$20 sps:$4 sm:$0xff]  }
 0x198   :  { %v1365_v20 = vpop.f32.mrb[8].mxu1 }
 0x199   :  { %3082 = vmatpush1.bf16.msra.mxu1 %v5172_v56  ;;  %3246 = vmatpush1.bf16.msra.mxu0 %v5175_v57  ;;  %v5647_v22 = vadd.f32 %v1365_v20, %v1326_v14  ;;  %v4692_v23 = vpop.f32.mrb[9].mxu1  ;;  %v5231_v56 = vld [vmem:[#allocation4 + $0x5d4] ss:$20 sps:$4 sm:$0xff]  }
 0x19a   :  { %3083 = vmatprep.subr.bf16.mxu1 %v5180_v59  ;;  %3247 = vmatprep.subr.bf16.mxu0 %v5183_v60  ;;  %v1368_v24 = vpop.f32.mrb[10].mxu1  ;;  %v5226_v60 = vld [vmem:[#allocation4 + $0x5c8] ss:$20 sps:$4 sm:$0xff]   ;;  %v5244_v14 = vld [vmem:[#allocation4 + $0x640] ss:$20 sps:$4 sm:$0xff]  }
 0x19b   :  { %v4693_v26 = vpop.f32.mrb[11].mxu1  ;;  %v5258_v20 = vld [vmem:[#allocation4 + $0x694] ss:$20 sps:$4 sm:$0xff]   ;;  %v5261_v23 = vld [vmem:[#allocation4 + $0x69c] ss:$20 sps:$4 sm:$0xff]  }
 0x19c   :  { %v5256_v24 = vld [vmem:[#allocation4 + $0x690] ss:$20 sps:$4 sm:$0xff]  }
 0x19d   :  { %3084 = vmatpush1.bf16.msra.mxu1 %v5178_v63  ;;  %3248 = vmatpush1.bf16.msra.mxu0 %v5181_v1  ;;  %v5234_v1 = vld [vmem:[#allocation4 + $0x5f4] ss:$20 sps:$4 sm:$0xff]   ;;  %v5267_v26 = vld [vmem:[#allocation4 + $0x6c4] ss:$20 sps:$4 sm:$0xff]  }
 0x19e   :  { %3085 = vmatprep.subr.bf16.mxu1 %v5186_v3  ;;  %3249 = vmatprep.subr.bf16.mxu0 %v5189_v5  ;;  %v5232_v3 = vld [vmem:[#allocation4 + $0x5f0] ss:$20 sps:$4 sm:$0xff]   ;;  %v5235_v5 = vld [vmem:[#allocation4 + $0x5f8] ss:$20 sps:$4 sm:$0xff]  }
 0x1a1   :  { %3086 = vmatpush1.bf16.msra.mxu1 %v5184_v7  ;;  %3250 = vmatpush1.bf16.msra.mxu0 %v5187_v9  ;;  %v5243_v7 = vld [vmem:[#allocation4 + $0x624] ss:$20 sps:$4 sm:$0xff]  }
 0x1a2   :  { %3087 = vmatprep.subr.bf16.mxu1 %v5192_v11  ;;  %3251 = vmatprep.subr.bf16.mxu0 %v5195_v13  ;;  %v5238_v9 = vld [vmem:[#allocation4 + $0x618] ss:$20 sps:$4 sm:$0xff]  }
 0x1a3   :  { %v5246_v11 = vld [vmem:[#allocation4 + $0x644] ss:$20 sps:$4 sm:$0xff]   ;;  %v5249_v13 = vld [vmem:[#allocation4 + $0x64c] ss:$20 sps:$4 sm:$0xff]  }
 0x1a5   :  { %3088 = vmatpush1.bf16.msra.mxu1 %v5190_v15  ;;  %3252 = vmatpush1.bf16.msra.mxu0 %v5193_v16  ;;  %v5247_v15 = vld [vmem:[#allocation4 + $0x648] ss:$20 sps:$4 sm:$0xff]   ;;  %v5252_v16 = vld [vmem:[#allocation4 + $0x66c] ss:$20 sps:$4 sm:$0xff]  }
 0x1a6   :  { %3098 = vmatprep.subr.bf16.mxu1 %v5198_v18  ;;  %3262 = vmatprep.subr.bf16.mxu0 %v5201_v19  ;;  %v5250_v18 = vld [vmem:[#allocation4 + $0x668] ss:$20 sps:$4 sm:$0xff]   ;;  %v5253_v19 = vld [vmem:[#allocation4 + $0x670] ss:$20 sps:$4 sm:$0xff]  }
 0x1a8   :  { %3090 = vmatmul.mubr.bf16.vlgmr.msra.gmra.mrb[12].mxu1 %v5649_v27  ;;  %3254 = vmatmul.mubr.bf16.vlgmr.msra.gmra.mrb[8].mxu0 %v5649_v27 }
 0x1a9   :  { %3099 = vmatpush1.bf16.msra.mxu1 %v5196_v0  ;;  %3263 = vmatpush1.bf16.msra.mxu0 %v5199_v25  ;;  %v5259_v0 = vld [vmem:[#allocation4 + $0x698] ss:$20 sps:$4 sm:$0xff]   ;;  %v5264_v25 = vld [vmem:[#allocation4 + $0x6bc] ss:$20 sps:$4 sm:$0xff]  }
 0x1aa   :  { %3100 = vmatprep.subr.bf16.mxu1 %v5204_v28  ;;  %3264 = vmatprep.subr.bf16.mxu0 %v5207_v30  ;;  %v5262_v28 = vld [vmem:[#allocation4 + $0x6b8] ss:$20 sps:$4 sm:$0xff]   ;;  %v5265_v30 = vld [vmem:[#allocation4 + $0x6c0] ss:$20 sps:$4 sm:$0xff]  }
 0x1ad   :  { %3101 = vmatpush1.bf16.msra.mxu1 %v5202_v31  ;;  %3265 = vmatpush1.bf16.msra.mxu0 %v5205_v32  ;;  %v5270_v31 = vld [vmem:[#allocation4 + $0x6e4] ss:$20 sps:$4 sm:$0xff]   ;;  %v5273_v32 = vld [vmem:[#allocation4 + $0x6ec] ss:$20 sps:$4 sm:$0xff]  }
 0x1ae   :  { %3102 = vmatprep.subr.bf16.mxu1 %v5210_v33  ;;  %3266 = vmatprep.subr.bf16.mxu0 %v5213_v61  ;;  %v5268_v33 = vld [vmem:[#allocation4 + $0x6e0] ss:$20 sps:$4 sm:$0xff]   ;;  %v5271_v61 = vld [vmem:[#allocation4 + $0x6e8] ss:$20 sps:$4 sm:$0xff]  }
 0x1b1   :  { %3103 = vmatpush1.bf16.msra.mxu1 %v5208_v34  ;;  %3267 = vmatpush1.bf16.msra.mxu0 %v5211_v39  ;;  %v268_v34 = vsub.s32 4, %v5607_v35  ;;  %v5276_v39 = vld [vmem:[#allocation4 + $0x70c] ss:$20 sps:$4 sm:$0xff]  }
 0x1b2   :  { %3104 = vmatprep.subr.bf16.mxu1 %v5216_v41  ;;  %3268 = vmatprep.subr.bf16.mxu0 %v5219_v42  ;;  %v5274_v41 = vld [vmem:[#allocation4 + $0x708] ss:$20 sps:$4 sm:$0xff]   ;;  %v5277_v42 = vld [vmem:[#allocation4 + $0x710] ss:$20 sps:$4 sm:$0xff]  }
 0x1b3   :  { %v5655_v48 = vpop.f32.mrb[4].mxu0  ;;  %v5390_v35 = vld [vmem:[%s5768_s7] sm:$0xff]  }
 0x1b4   :  { %v1286_v50 = vpop.f32.mrb[5].mxu0 }
 0x1b5   :  { %3105 = vmatpush1.bf16.msra.mxu1 %v5214_v43  ;;  %3269 = vmatpush1.bf16.msra.mxu0 %v5217_v44  ;;  %v4743_v21 = vadd.f32 %v1286_v50, %v273_v45  ;;  %v1288_v54 = vpop.f32.mrb[6].mxu0  ;;  %v269_v43 = vrot.slane %v5613_v37, %v268_v34  ;;  %v5282_v44 = vld [vmem:[#allocation4 + $0x734] ss:$20 sps:$4 sm:$0xff]   ;;  %v5285_v45 = vld [vmem:[#allocation4 + $0x73c] ss:$20 sps:$4 sm:$0xff]  }
 0x1b6   :  { %3106 = vmatprep.subr.bf16.mxu1 %v5222_v46  ;;  %3270 = vmatprep.subr.bf16.mxu0 %v5225_v47  ;;  %v1289_v57 = vpop.f32.mrb[7].mxu0  ;;  %v5280_v46 = vld [vmem:[#allocation4 + $0x730] ss:$20 sps:$4 sm:$0xff]   ;;  %v5283_v47 = vld [vmem:[#allocation4 + $0x738] ss:$20 sps:$4 sm:$0xff]  }
 0x1b7   :  { %v1376_v59 = vmax.f32 %v4743_v21, 0.0  ;;  %v4742_v50 = vadd.f32 %v5655_v48, %v269_v43  ;;  %v5286_v21 = vld [vmem:[#allocation4 + $0x758] ss:$20 sps:$4 sm:$0xff]   ;;  %v5289_v54 = vld [vmem:[#allocation4 + $0x760] ss:$20 sps:$4 sm:$0xff]  }
 0x1b8   :  { %v5294_v37 = vld [vmem:[#allocation4 + $0x784] ss:$20 sps:$4 sm:$0xff]   ;;  %v1679_v57 = vld [vmem:[#allocation4 + $0x7a8] sm:$0xff] }
 0x1b9   :  { %3107 = vmatpush1.bf16.msra.mxu1 %v5220_v51  ;;  %3271 = vmatpush1.bf16.msra.mxu0 %v5223_v29  ;;  %v5657_v63 = vpack.c.bf16 %v1376_v59, %v1376_v59  ;;  %v5288_v51 = vld [vmem:[#allocation4 + $0x75c] ss:$20 sps:$4 sm:$0xff]   ;;  %v5291_v29 = vld [vmem:[#allocation4 + $0x764] ss:$20 sps:$4 sm:$0xff]   ;;  %v5292_v59 = vld [vmem:[#allocation4 + $0x780] ss:$20 sps:$4 sm:$0xff]  }
 0x1ba   :  { %3108 = vmatprep.subr.bf16.mxu1 %v5228_v55  ;;  %3272 = vmatprep.subr.bf16.mxu0 %v5231_v56  ;;  %v1375_v55 = vmax.f32 %v4742_v50, 0.0  ;;  %v5295_v56 = vld [vmem:[#allocation4 + $0x3d0] ss:$20 sps:$4 sm:$0xff]   ;;  %v5297_v48 = vld [vmem:[#allocation4 + $0x3f8] ss:$20 sps:$4 sm:$0xff]   ;;  %v5359_v50 = vld [vmem:[#allocation6 + $0x80] sm:$0xff]  }
 0x1bb   :  { %3130 = vmatprep.mubr.bf16.mxu1 %v5657_v63  ;;  %3294 = vmatprep.mubr.bf16.mxu0 %v5657_v63  ;;  %v5330_v43 = vld [vmem:[#allocation4 + $0x218] ss:$20 sps:$4 sm:$0xff]  }
 0x1bd   :  { %3109 = vmatpush1.bf16.msra.mxu1 %v5226_v60  ;;  %3273 = vmatpush1.bf16.msra.mxu0 %v5229_v62  ;;  %v5296_v60 = vld [vmem:[#allocation4 + $0x290] ss:$20 sps:$4 sm:$0xff]   ;;  %v5666_v62 = vpack.c.bf16 %v1375_v55, %v1375_v55  ;;  %v5338_v55 = vld [vmem:[#allocation4 + $0x678] ss:$20 sps:$4 sm:$0xff]  }
 0x1be   :  { %3110 = vmatprep.subr.bf16.mxu1 %v5234_v1  ;;  %3274 = vmatprep.subr.bf16.mxu0 %v5237_v2  ;;  %v4464_v1 = vcombine.low %v1679_v57, %v1679_v57  ;;  %v4465_v2 = vcombine.high %v1679_v57, %v1679_v57  ;;  %v5341_v57 = vld [vmem:[#allocation4 + $0x560] ss:$20 sps:$4 sm:$0xff]  }
 0x1c1   :  { %3111 = vmatpush1.bf16.msra.mxu1 %v5232_v3  ;;  %3275 = vmatpush1.bf16.msra.mxu0 %v5235_v5  ;;  %v5298_v3 = vld [vmem:[#allocation4 + $0x2b8] ss:$20 sps:$4 sm:$0xff]   ;;  %v3002_v5 = vsel %vm3000_vm2, %v4464_v1, 0  ;;  %v5345_v1 = vld [vmem:[#allocation4 + $0x5b0] ss:$20 sps:$4 sm:$0xff]  }
 0x1c2   :  { %3112 = vmatprep.subr.bf16.mxu1 %v5240_v6  ;;  %3276 = vmatprep.subr.bf16.mxu0 %v5243_v7  ;;  %v5301_v6 = vld [vmem:[#allocation4 + $0x420] ss:$20 sps:$4 sm:$0xff]  }
 0x1c3   :  { %v5305_v7 = vld [vmem:[#allocation4 + $0x78c] ss:$20 sps:$4 sm:$0xff]  }
 0x1c5   :  { %3113 = vmatpush1.bf16.msra.mxu1 %v5238_v9  ;;  %3277 = vmatpush1.bf16.msra.mxu0 %v5241_v10  ;;  %v5302_v9 = vld [vmem:[#allocation4 + $0x2e0] ss:$20 sps:$4 sm:$0xff]   ;;  %v1377_v10 = vmax.f32 %v5647_v22, 0.0  ;;  %v5311_v22 = vld [vmem:[#allocation4 + $0x330] ss:$20 sps:$4 sm:$0xff]  }
 0x1c6   :  { %3114 = vmatprep.subr.bf16.mxu1 %v5246_v11  ;;  %3278 = vmatprep.subr.bf16.mxu0 %v5249_v13  ;;  %v5306_v11 = vld [vmem:[#allocation4 + $0x448] ss:$20 sps:$4 sm:$0xff]   ;;  %v1680_v13 = vld [vmem:[#allocation4 + $0x7b0] sm:$0xff] }
 0x1c9   :  { %3115 = vmatpush1.bf16.msra.mxu1 %v5244_v14  ;;  %3279 = vmatpush1.bf16.msra.mxu0 %v5247_v15  ;;  %v5307_v14 = vld [vmem:[#allocation4 + $0x308] ss:$20 sps:$4 sm:$0xff]   ;;  %v5675_v15 = vpack.c.bf16 %v1377_v10, %v1377_v10 }
 0x1ca   :  { %3116 = vmatprep.subr.bf16.mxu1 %v5252_v16  ;;  %3280 = vmatprep.subr.bf16.mxu0 %v5255_v17  ;;  %v4467_v16 = vcombine.high %v1680_v13, %v1680_v13  ;;  %v4466_v17 = vcombine.low %v1680_v13, %v1680_v13  ;;  %v5354_v10 = vld [vmem:[#allocation6 + $0x48] sm:$0xff]  }
 0x1cb   :  { %v5363_v13 = vld [vmem:[#allocation6 + $0x88] sm:$0xff]  }
 0x1cd   :  { %3117 = vmatpush1.bf16.msra.mxu1 %v5250_v18  ;;  %3281 = vmatpush1.bf16.msra.mxu0 %v5253_v19  ;;  %v5310_v18 = vld [vmem:[#allocation4 + $0x470] ss:$20 sps:$4 sm:$0xff]   ;;  %v3008_v19 = vsel %vm3000_vm2, %v4466_v17, 0  ;;  %v5369_v17 = vld [vmem:[#allocation6 + $0xd8] sm:$0xff]  }
 0x1ce   :  { %3118 = vmatprep.subr.bf16.mxu1 %v5258_v20  ;;  %3282 = vmatprep.subr.bf16.mxu0 %v5261_v23  ;;  %v5312_v20 = vld [vmem:[#allocation4 + $0x150] ss:$20 sps:$4 sm:$0xff]   ;;  %v5314_v23 = vld [vmem:[#allocation4 + $0x498] ss:$20 sps:$4 sm:$0xff]  }
 0x1d1   :  { %3119 = vmatpush1.bf16.msra.mxu1 %v5256_v24  ;;  %3283 = vmatpush1.bf16.msra.mxu0 %v5259_v0  ;;  %v5313_v24 = vld [vmem:[#allocation4 + $0x10] ss:$20 sps:$4 sm:$0xff]   ;;  %v5315_v0 = vld [vmem:[#allocation4 + $0x358] ss:$20 sps:$4 sm:$0xff]  }
 0x1d2   :  { %3120 = vmatprep.subr.bf16.mxu1 %v5264_v25  ;;  %3284 = vmatprep.subr.bf16.mxu0 %v5267_v26  ;;  %v5316_v25 = vld [vmem:[#allocation4 + $0x178] ss:$20 sps:$4 sm:$0xff]   ;;  %v5318_v26 = vld [vmem:[#allocation4 + $0x4c0] ss:$20 sps:$4 sm:$0xff]  }
 0x1d5   :  { %3121 = vmatpush1.bf16.msra.mxu1 %v5262_v28  ;;  %3285 = vmatpush1.bf16.msra.mxu0 %v5265_v30  ;;  %v5317_v28 = vld [vmem:[#allocation4 + $0x38] ss:$20 sps:$4 sm:$0xff]   ;;  %v5319_v30 = vld [vmem:[#allocation4 + $0x380] ss:$20 sps:$4 sm:$0xff]  }
 0x1d6   :  { %3122 = vmatprep.subr.bf16.mxu1 %v5270_v31  ;;  %3286 = vmatprep.subr.bf16.mxu0 %v5273_v32  ;;  %v5320_v31 = vld [vmem:[#allocation4 + $0x1a0] ss:$20 sps:$4 sm:$0xff]  }
 0x1d7   :  { %v5321_v32 = vld [vmem:[#allocation4 + $0x60] ss:$20 sps:$4 sm:$0xff]  }
 0x1d9   :  { %3123 = vmatpush1.bf16.msra.mxu1 %v5268_v33  ;;  %3287 = vmatpush1.bf16.msra.mxu0 %v5271_v61  ;;  %v5323_v33 = vld [vmem:[#allocation4 + $0x3a8] ss:$20 sps:$4 sm:$0xff]  }
 0x1da   :  { %3124 = vmatprep.subr.bf16.mxu1 %v5276_v39  ;;  %3288 = vmatprep.subr.bf16.mxu0 %v5279_v40  ;;  %v5324_v61 = vld [vmem:[#allocation4 + $0x1c8] ss:$20 sps:$4 sm:$0xff]   ;;  %v5326_v40 = vld [vmem:[#allocation4 + $0x790] ss:$20 sps:$4 sm:$0xff]  }
 0x1db   :  { %v5325_v39 = vld [vmem:[#allocation4 + $0x88] ss:$20 sps:$4 sm:$0xff]  }
 0x1dd   :  { %3125 = vmatpush1.bf16.msra.mxu1 %v5274_v41  ;;  %3289 = vmatpush1.bf16.msra.mxu0 %v5277_v42  ;;  %v5329_v41 = vld [vmem:[#allocation4 + $0x7b8] ss:$0 sps:$4 sm:$0xff]   ;;  %v5328_v42 = vld [vmem:[#allocation4 + $0xb0] ss:$20 sps:$4 sm:$0xff]  }
 0x1de   :  { %3126 = vmatprep.subr.bf16.mxu1 %v5282_v44  ;;  %3290 = vmatprep.subr.bf16.mxu0 %v5285_v45  ;;  %v3014_v44 = vsel %vm3000_vm2, %v5329_v41, 0  ;;  %v5357_v45 = vld [vmem:[#allocation6 + $0xc0] sm:$0xff]  }
 0x1e1   :  { %3127 = vmatpush1.bf16.msra.mxu1 %v5280_v46  ;;  %3291 = vmatpush1.bf16.msra.mxu0 %v5283_v47  ;;  %v5331_v46 = vld [vmem:[#allocation4 + $0xd8] ss:$20 sps:$4 sm:$0xff]   ;;  %v5332_v47 = vld [vmem:[#allocation4 + $0x240] ss:$20 sps:$4 sm:$0xff]  }
 0x1e2   :  { %3128 = vmatprep.subr.bf16.mxu1 %v5288_v51  ;;  %3292 = vmatprep.subr.bf16.mxu0 %v5291_v29  ;;  %v5334_v51 = vld [vmem:[#allocation4 + $0x268] ss:$20 sps:$4 sm:$0xff]  }
 0x1e3   :  { %v5335_v29 = vld [vmem:[#allocation4 + $0x128] ss:$20 sps:$4 sm:$0xff]  }
 0x1e5   :  { %3129 = vmatpush1.bf16.msra.mxu1 %v5286_v21  ;;  %3293 = vmatpush1.bf16.msra.mxu0 %v5289_v54  ;;  %v5336_v21 = vld [vmem:[#allocation4 + $0x650] ss:$20 sps:$4 sm:$0xff]  }
 0x1e6   :  { %3139 = vmatprep.subr.bf16.mxu1 %v5294_v37  ;;  %4573 = vmatprep.subr.bf16.mxu0 %v5295_v56  ;;  %v5337_v54 = vld [vmem:[#allocation4 + $0x510] ss:$20 sps:$4 sm:$0xff]   ;;  %v5339_v37 = vld [vmem:[#allocation4 + $0x538] ss:$20 sps:$4 sm:$0xff]   ;;  %v5340_v56 = vld [vmem:[#allocation4 + $0x6a0] ss:$20 sps:$4 sm:$0xff]  }
 0x1e8   :  { %3131 = vmatmul.mubr.bf16.vlgmr.msra.gmra.mrb[12].mxu1 %v5666_v62  ;;  %3295 = vmatmul.mubr.bf16.vlgmr.msra.gmra.mrb[8].mxu0 %v5666_v62 }
 0x1e9   :  { %3140 = vmatpush1.bf16.msra.mxu1 %v5292_v59  ;;  %4574 = vmatpush3.bf16.msra.mxu0 %v5296_v60  ;;  %v5342_v59 = vld [vmem:[#allocation4 + $0x6c8] ss:$20 sps:$4 sm:$0xff]  }
 0x1ea   :  { %3416 = vmatprep.mubr.bf16.mxu0 %v5636_v12  ;;  %4575 = vmatprep.subr.bf16.mxu0 %v5297_v48  ;;  %v5303_v12 = vld [vmem:[#allocation4 + $0x788] ss:$20 sps:$4 sm:$0xff]   ;;  %v5344_v48 = vld [vmem:[#allocation4 + $0x6f0] ss:$20 sps:$4 sm:$0xff]  }
 0x1eb   :  { %4469 = vmatprep.subr.msk.bf16.mxu1 %vm3000_vm2, %v4465_v2  ;;  %3171 = vmatprep.mubr.bf16.mxu1 %v5477_v4  ;;  %v5343_v60 = vld [vmem:[#allocation4 + $0x588] ss:$20 sps:$4 sm:$0xff]   ;;  %v5346_v2 = vld [vmem:[#allocation4 + $0x718] ss:$20 sps:$4 sm:$0xff]  }
 0x1ed   :  { %4576 = vmatpush3.bf16.msra.mxu0 %v5298_v3  ;;  %3142 = vmatpush1.bf16.msra.mxu1 %v3002_v5  ;;  %v5348_v3 = vld [vmem:[#allocation4 + $0x740] ss:$20 sps:$4 sm:$0xff]   ;;  %v5350_v5 = vld [vmem:[#allocation4 + $0x768] ss:$20 sps:$4 sm:$0xff]  }
 0x1ee   :  { %4577 = vmatprep.subr.bf16.mxu0 %v5301_v6  ;;  %3303 = vmatprep.subr.bf16.mxu1 %v5305_v7  ;;  %v5351_v6 = vld [vmem:[#allocation4 + $0x628] ss:$20 sps:$4 sm:$0xff]  }
 0x1ef   :  { %v5352_v7 = vld [vmem:[#allocation6 + $0x40] sm:$0xff]  }
 0x1f1   :  { %4578 = vmatpush3.bf16.msra.mxu0 %v5302_v9  ;;  %v5353_v9 = vld [vmem:[#allocation6] sm:$0xff]  }
 0x1f2   :  { %4579 = vmatprep.subr.bf16.mxu0 %v5306_v11  ;;  %v5361_v11 = vld [vmem:[#allocation6 + $0xc8] sm:$0xff]  }
 0x1f4   :  { %4470 = vmatmul.mubr.msk.bf16.vlgmr.msra.gmra.mrb[12].mxu1 %vm2996_vm3, %v5675_v15 }
 0x1f5   :  { %3304 = vmatpush1.bf16.msra.mxu1 %v5303_v12  ;;  %4580 = vmatpush3.bf16.msra.mxu0 %v5307_v14  ;;  %v5355_v12 = vld [vmem:[#allocation6 + $0x8] sm:$0xff]   ;;  %v5356_v14 = vld [vmem:[#allocation6 + $0x50] sm:$0xff]  }
 0x1f6   :  { %4471 = vmatprep.subr.msk.bf16.mxu1 %vm3000_vm2, %v4467_v16  ;;  %4581 = vmatprep.subr.bf16.mxu0 %v5310_v18  ;;  %v5367_v16 = vld [vmem:[#allocation6 + $0x90] sm:$0xff]  }
 0x1f7   :  { %3335 = vmatprep.mubr.bf16.mxu1 %v5477_v4  ;;  %v5322_v4 = vld [vmem:[#allocation4 + $0x4e8] ss:$20 sps:$4 sm:$0xff]   ;;  %v5358_v18 = vld [vmem:[#allocation6 + $0x10] sm:$0xff]  }
 0x1f9   :  { %3306 = vmatpush1.bf16.msra.mxu1 %v3008_v19  ;;  %4582 = vmatpush3.bf16.msra.mxu0 %v5311_v22  ;;  %v5360_v22 = vld [vmem:[#allocation6 + $0x58] sm:$0xff]  }
 0x1fa   :  { %4551 = vmatprep.subr.bf16.mxu1 %v5312_v20  ;;  %4583 = vmatprep.subr.bf16.mxu0 %v5314_v23  ;;  %v5371_v19 = vld [vmem:[#allocation6 + $0x98] sm:$0xff]   ;;  %v5364_v20 = vld [vmem:[#allocation6 + $0x60] sm:$0xff]  }
 0x1fb   :  { %v5373_v23 = vld [vmem:[#allocation6 + $0xe0] sm:$0xff]  }
 0x1fc   :  { %4472 = vmatmul.mubr.msk.bf16.vlgmr.msra.gmra.mrb[16].mxu1 %vm2996_vm3, %v5675_v15 }
 0x1fd   :  { %4552 = vmatpush3.bf16.msra.mxu1 %v5313_v24  ;;  %3376 = vmatprep.mubr.bf16.mxu1 %v5622_v49  ;;  %v5327_v49 = vld [vmem:[#allocation4 + $0x1f0] ss:$20 sps:$4 sm:$0xff]   ;;  %v5375_v24 = vld [vmem:[#allocation6 + $0xa0] sm:$0xff]  }
 0x1fe   :  { %4584 = vmatpush3.bf16.msra.mxu0 %v5315_v0  ;;  %4553 = vmatprep.subr.bf16.mxu1 %v5316_v25  ;;  %v5366_v0 = vld [vmem:[#allocation6 + $0x20] sm:$0xff]   ;;  %v5368_v25 = vld [vmem:[#allocation6 + $0x68] sm:$0xff]  }
 0x1ff   :  { %4585 = vmatprep.subr.bf16.mxu0 %v5318_v26  ;;  %v5377_v26 = vld [vmem:[#allocation6 + $0xe8] sm:$0xff]  }
 0x201   :  { %4554 = vmatpush3.bf16.msra.mxu1 %v5317_v28  ;;  %v5379_v28 = vld [vmem:[#allocation6 + $0xa8] sm:$0xff]  }
 0x202   :  { %4586 = vmatpush3.bf16.msra.mxu0 %v5319_v30  ;;  %4555 = vmatprep.subr.bf16.mxu1 %v5320_v31  ;;  %v5370_v30 = vld [vmem:[#allocation6 + $0x28] sm:$0xff]   ;;  %v5372_v31 = vld [vmem:[#allocation6 + $0x70] sm:$0xff]  }
 0x203   :  { %4587 = vmatprep.subr.bf16.mxu0 %v5322_v4  ;;  %v5380_v4 = vld [vmem:[#allocation6 + $0xf0] sm:$0xff]  }
 0x205   :  { %4556 = vmatpush3.bf16.msra.mxu1 %v5321_v32  ;;  %v5381_v32 = vld [vmem:[#allocation6 + $0xb0] sm:$0xff]  }
 0x206   :  { %4588 = vmatpush3.bf16.msra.mxu0 %v5323_v33  ;;  %4557 = vmatprep.subr.bf16.mxu1 %v5324_v61  ;;  %v5374_v33 = vld [vmem:[#allocation6 + $0x30] sm:$0xff]   ;;  %v5376_v61 = vld [vmem:[#allocation6 + $0x78] sm:$0xff]  }
 0x207   :  { %4694 = vmatprep.subr.bf16.mxu0 %v5478_v8 }
 0x209   :  { %4558 = vmatpush3.bf16.msra.mxu1 %v5325_v39  ;;  %3417 = vmatmul.mubr.bf16.vlgmr.msra.gmra.mrb[12].mxu0 %v5649_v27  ;;  %v5333_v27 = vld [vmem:[#allocation4 + $0x100] ss:$20 sps:$4 sm:$0xff]  }
 0x20a   :  { %4695 = vmatpush3.bf16.msra.mxu0 %v5326_v40  ;;  %4559 = vmatprep.subr.bf16.mxu1 %v5327_v49  ;;  %v5382_v39 = vld [vmem:[#allocation6 + $0xf8] sm:$0xff]  }
 0x20b   :  { %4696 = vmatprep.subr.bf16.mxu0 %v5478_v8  ;;  %4698 = vmatprep.mubr.msk.bf16.mxu0 %vm5479_vm1, %v5478_v8  ;;  %v5383_v40 = vld [vmem:[#allocation6 + $0xb8] sm:$0xff]  }
 0x20c   :  { %v5378_v49 = vld [vmem:[#allocation6 + $0x38] sm:$0xff]  }
 0x20d   :  { %4560 = vmatpush3.bf16.msra.mxu1 %v5328_v42 }
 0x20e   :  { %4697 = vmatpush3.bf16.msra.mxu0 %v3014_v44  ;;  %4561 = vmatprep.subr.bf16.mxu1 %v5330_v43 }
 0x20f   :  { %4642 = vmatprep.subr.bf16.mxu0 %v5357_v45  ;;  %v1682_v45 = vld [vmem:[%s5765_s4] sm:$0x1f] }
 0x211   :  { %4562 = vmatpush3.bf16.msra.mxu1 %v5331_v46  ;;  %4699 = vmatmul.mubr.msk.bf16.vlgmr.msra.gmra.mrb[16].mxu0 %vm2996_vm3, %v5675_v15  ;;  %v5365_v15 = vld [vmem:[#allocation6 + $0xd0] sm:$0xff]   ;;  %v1687_v46 = vrot.slane %v1682_v45, %v252_v36 }
 0x212   :  { %4563 = vmatprep.subr.bf16.mxu1 %v5332_v47  ;;  %4643 = vmatpush3.bf16.msra.mxu0 %v5359_v50  ;;  %v1691_v47 = vrot.slane %v1682_v45, %v256_v38 }
 0x213   :  { %4644 = vmatprep.subr.bf16.mxu0 %v5361_v11  ;;  %v5387_v11 = vld [vmem:[#allocation6 + $0x118] sm:$0xff]  }
 0x215   :  { %4564 = vmatpush3.bf16.msra.mxu1 %v5333_v27 }
 0x216   :  { %4565 = vmatprep.subr.bf16.mxu1 %v5334_v51  ;;  %4645 = vmatpush3.bf16.msra.mxu0 %v5363_v13 }
 0x217   :  { %4646 = vmatprep.subr.bf16.mxu0 %v5365_v15 }
 0x219   :  { %4566 = vmatpush3.bf16.msra.mxu1 %v5335_v29 }
 0x21a   :  { %4595 = vmatprep.subr.bf16.mxu1 %v5336_v21  ;;  %4647 = vmatpush3.bf16.msra.mxu0 %v5367_v16 }
 0x21b   :  { %4648 = vmatprep.subr.bf16.mxu0 %v5369_v17  ;;  %v5389_v17 = vld [vmem:[#allocation6 + $0x128] ss:$0 sps:$4 sm:$0xff]  }
 0x21c   :  { %3377 = vmatmul.mubr.bf16.vlgmr.msra.gmra.mrb[20].mxu1 %v5624_v52  ;;  %v5347_v52 = vld [vmem:[#allocation4 + $0x5d8] ss:$20 sps:$4 sm:$0xff]  }
 0x21d   :  { %4596 = vmatpush3.bf16.msra.mxu1 %v5337_v54  ;;  %3456 = vmatprep.mubr.bf16.mxu1 %v5657_v63  ;;  %v5349_v63 = vld [vmem:[#allocation4 + $0x600] ss:$20 sps:$4 sm:$0xff]   ;;  %v1695_v54 = vrot.slane %v1682_v45, %v260_v58  ;;  %v5385_v58 = vld [vmem:[#allocation6 + $0x108] sm:$0xff]  }
 0x21e   :  { %4597 = vmatprep.subr.bf16.mxu1 %v5338_v55  ;;  %4649 = vmatpush3.bf16.msra.mxu0 %v5371_v19 }
 0x21f   :  { %4650 = vmatprep.subr.bf16.mxu0 %v5373_v23 }
 0x221   :  { %4598 = vmatpush3.bf16.msra.mxu1 %v5339_v37 }
 0x222   :  { %4599 = vmatprep.subr.bf16.mxu1 %v5340_v56  ;;  %4651 = vmatpush3.bf16.msra.mxu0 %v5375_v24  ;;  %v1699_v56 = vrot.slane %v1682_v45, %v264_v53 }
 0x223   :  { %4652 = vmatprep.subr.bf16.mxu0 %v5377_v26 }
 0x225   :  { %4600 = vmatpush3.bf16.msra.mxu1 %v5341_v57 }
 0x226   :  { %4601 = vmatprep.subr.bf16.mxu1 %v5342_v59  ;;  %4653 = vmatpush3.bf16.msra.mxu0 %v5379_v28 }
 0x227   :  { %4654 = vmatprep.subr.bf16.mxu0 %v5380_v4 }
 0x229   :  { %4602 = vmatpush3.bf16.msra.mxu1 %v5343_v60  ;;  %v5384_v60 = vld [vmem:[#allocation6 + $0x100] sm:$0xff]  }
 0x22a   :  { %4603 = vmatprep.subr.bf16.mxu1 %v5344_v48  ;;  %4655 = vmatpush3.bf16.msra.mxu0 %v5381_v32 }
 0x22b   :  { %4656 = vmatprep.subr.bf16.mxu0 %v5382_v39 }
 0x22d   :  { %4604 = vmatpush3.bf16.msra.mxu1 %v5345_v1 }
 0x22e   :  { %4605 = vmatprep.subr.bf16.mxu1 %v5346_v2  ;;  %4657 = vmatpush3.bf16.msra.mxu0 %v5383_v40 }
 0x22f   :  { %4718 = vmatprep.subr.bf16.mxu0 %v5478_v8 }
 0x231   :  { %4606 = vmatpush3.bf16.msra.mxu1 %v5347_v52 }
 0x232   :  { %4607 = vmatprep.subr.bf16.mxu1 %v5348_v3 }
 0x235   :  { %4608 = vmatpush3.bf16.msra.mxu1 %v5349_v63 }
 0x236   :  { %4609 = vmatprep.subr.bf16.mxu1 %v5350_v5 }
 0x239   :  { %4610 = vmatpush3.bf16.msra.mxu1 %v5351_v6 }
 0x23a   :  { %4620 = vmatprep.subr.bf16.mxu1 %v5352_v7 }
 0x23c   :  { %3457 = vmatmul.mubr.bf16.vlgmr.msra.gmra.mrb[24].mxu1 %v5666_v62  ;;  %v5362_v62 = vld [vmem:[#allocation6 + $0x18] sm:$0xff]  }
 0x23d   :  { %4621 = vmatpush3.bf16.msra.mxu1 %v5353_v9  ;;  %v5386_v9 = vld [vmem:[#allocation6 + $0x110] sm:$0xff]  }
 0x23e   :  { %4622 = vmatprep.subr.bf16.mxu1 %v5354_v10 }
 0x241   :  { %4623 = vmatpush3.bf16.msra.mxu1 %v5355_v12 }
 0x242   :  { %4624 = vmatprep.subr.bf16.mxu1 %v5356_v14  ;;  %v5388_v14 = vld [vmem:[#allocation6 + $0x120] sm:$0xff]  }
 0x245   :  { %4625 = vmatpush3.bf16.msra.mxu1 %v5358_v18 }
 0x246   :  { %4626 = vmatprep.subr.bf16.mxu1 %v5360_v22  ;;  %v3826_v22 = vsel %vm3000_vm2, %v5389_v17, 0 }
 0x249   :  { %4627 = vmatpush3.bf16.msra.mxu1 %v5362_v62 }
 0x24a   :  { %4628 = vmatprep.subr.bf16.mxu1 %v5364_v20 }
 0x24d   :  { %4629 = vmatpush3.bf16.msra.mxu1 %v5366_v0  ;;  %v1703_v0 = vrot.slane %v1682_v45, %v268_v34  ;;  %v5391_v34 = vld [vmem:[%s5768_s7 + $0x8] sm:$0xff]   ;;  %v5393_v45 = vld [vmem:[%s5768_s7 + $0x18] sm:$0xff]  }
 0x24e   :  { %4630 = vmatprep.subr.bf16.mxu1 %v5368_v25 }
 0x251   :  { %4631 = vmatpush3.bf16.msra.mxu1 %v5370_v30 }
 0x252   :  { %4632 = vmatprep.subr.bf16.mxu1 %v5372_v31 }
 0x255   :  { %4633 = vmatpush3.bf16.msra.mxu1 %v5374_v33 }
 0x256   :  { %4634 = vmatprep.subr.bf16.mxu1 %v5376_v61 }
 0x259   :  { %4635 = vmatpush3.bf16.msra.mxu1 %v5378_v49 }
 0x25a   :  { %4702 = vmatprep.subr.bf16.mxu1 %v5478_v8 }
 0x2bb   :  { %v3296_v41 = vpop.f32.mrb[8].mxu0 }
 0x2bc   :  { %v3298_v42 = vpop.f32.mrb[9].mxu0  ;;  %v4746_v36 = vadd.f32 %v3296_v41, %v1695_v54 }
 0x2bd   :  { %v3300_v43 = vpop.f32.mrb[10].mxu0  ;;  %v4748_v1 = vadd.f32 %v3298_v42, %v1699_v56 }
 0x2be   :  { %v3301_v44 = vpop.f32.mrb[11].mxu0 }
 0x2bf   :  { %v5392_v44 = vld [vmem:[%s5768_s7 + $0x10] sm:$0xff]  }
 0x2c7   :  { %v3173_v50 = vpop.f32.mrb[12].mxu1 }
 0x2c8   :  { %v4744_v27 = vadd.f32 %v3173_v50, %v1687_v46  ;;  %v3175_v51 = vpop.f32.mrb[13].mxu1  ;;  %v5394_v46 = vld [vmem:[%s5768_s7 + $0x20] sm:$0xff]   ;;  %v5396_v50 = vld [vmem:[%s5768_s7 + $0x30] sm:$0xff]  }
 0x2c9   :  { %v4745_v29 = vadd.f32 %v3175_v51, %v1691_v47  ;;  %v3177_v21 = vpop.f32.mrb[14].mxu1  ;;  %v5395_v47 = vld [vmem:[%s5768_s7 + $0x28] sm:$0xff]  }
 0x2ca   :  { %v3504_v55 = vmax.f32 %v4744_v27, 0.0  ;;  %v3178_v37 = vpop.f32.mrb[15].mxu1  ;;  %v5397_v27 = vld [vmem:[%s5768_s7 + $0x38] sm:$0xff]  }
 0x2cb   :  { %v3505_v57 = vmax.f32 %v4745_v29, 0.0  ;;  %v4474_v37 = vld [vmem:[%s5767_s6] ss:$0 sm:$0xff] }
 0x2cc   :  { %v3509_v48 = vpack.c.bf16 %v3504_v55, %v3504_v55 }
 0x2cd   :  { %v3510_v59 = vpack.c.bf16 %v3505_v57, %v3505_v57 }
 0x2cf   :  { %v3337_v38 = vpop.f32.mrb[16].mxu1  ;;  %3860 = vmatprep.mubr.bf16.mxu1 %v3510_v59 }
 0x2d0   :  { %v4747_v2 = vadd.f32 %v4746_v36, %v3337_v38  ;;  %v3339_v52 = vpop.f32.mrb[17].mxu1  ;;  %3861 = vmatmul.mubr.bf16.vlgmr.msra.gmra.mrb[28].mxu1 %v3509_v48 }
 0x2d1   :  { %v4749_v3 = vadd.f32 %v4748_v1, %v3339_v52  ;;  %v3341_v63 = vpop.f32.mrb[18].mxu1  ;;  %4703 = vmatpush3.bf16.msra.mxu1 %v5384_v60  ;;  %4714 = vmatprep.mubr.msk.bf16.mxu1 %vm5479_vm1, %v5478_v8 }
 0x2d2   :  { %v3506_v5 = vmax.f32 %v4747_v2, 0.0  ;;  %v3342_v53 = vpop.f32.mrb[19].mxu1  ;;  %4704 = vmatprep.subr.bf16.mxu1 %v5478_v8 }
 0x2d3   :  { %v3507_v6 = vmax.f32 %v4749_v3, 0.0 }
 0x2d4   :  { %v3511_v10 = vpack.c.bf16 %v3506_v5, %v3506_v5  ;;  %v4514_v5 = vld [vmem:[%s5769_s8] ss:$0 sm:$0xff] }
 0x2d5   :  { %v3512_v7 = vpack.c.bf16 %v3507_v6, %v3507_v6  ;;  %4705 = vmatpush3.bf16.msra.mxu1 %v5385_v58 }
 0x2d6   :  { %4706 = vmatprep.subr.bf16.mxu1 %v5478_v8 }
 0x2d7   :  { %3900 = vmatprep.mubr.bf16.mxu0 %v3512_v7 }
 0x2d8   :  { %3901 = vmatmul.mubr.bf16.vlgmr.msra.gmra.mrb[20].mxu0 %v3511_v10 }
 0x2d9   :  { %4707 = vmatpush3.bf16.msra.mxu1 %v5386_v9  ;;  %4734 = vmatprep.mubr.msk.bf16.mxu0 %vm5479_vm1, %v5478_v8 }
 0x2da   :  { %4708 = vmatprep.subr.bf16.mxu1 %v5478_v8  ;;  %4719 = vmatpush3.bf16.msra.mxu0 %v5390_v35 }
 0x2db   :  { %4720 = vmatprep.subr.bf16.mxu0 %v5478_v8 }
 0x2dc   :  { %v4589_v13 = vpop.f32.mrb[12].mxu0 }
 0x2dd   :  { %v4590_v12 = vpop.f32.mrb[13].mxu0  ;;  %4709 = vmatpush3.bf16.msra.mxu1 %v5387_v11 }
 0x2de   :  { %v4591_v15 = vadd.f32 %v4590_v12, %v4589_v13  ;;  %v4592_v16 = vpop.f32.mrb[14].mxu0  ;;  %4710 = vmatprep.subr.bf16.mxu1 %v5478_v8  ;;  %4721 = vmatpush3.bf16.msra.mxu0 %v5391_v34 }
 0x2df   :  { %v4593_v18 = vpop.f32.mrb[15].mxu0  ;;  %4722 = vmatprep.subr.bf16.mxu0 %v5478_v8 }
 0x2e1   :  { %4711 = vmatpush3.bf16.msra.mxu1 %v5388_v14 }
 0x2e2   :  { %4712 = vmatprep.subr.bf16.mxu1 %v5478_v8  ;;  %4723 = vmatpush3.bf16.msra.mxu0 %v5392_v44 }
 0x2e3   :  { %4724 = vmatprep.subr.bf16.mxu0 %v5478_v8 }
 0x2e4   :  { %v3498_v19 = vpop.f32.mrb[16].mxu0 }
 0x2e5   :  { %v4700_v62 = vpop.f32.mrb[17].mxu0  ;;  %4713 = vmatpush3.bf16.msra.mxu1 %v3826_v22 }
 0x2e6   :  { %v3501_v20 = vpop.f32.mrb[18].mxu0  ;;  %4725 = vmatpush3.bf16.msra.mxu0 %v5393_v45 }
 0x2e7   :  { %v4701_v23 = vpop.f32.mrb[19].mxu0  ;;  %4726 = vmatprep.subr.bf16.mxu0 %v5478_v8 }
 0x2ea   :  { %4727 = vmatpush3.bf16.msra.mxu0 %v5394_v46 }
 0x2eb   :  { %4728 = vmatprep.subr.bf16.mxu0 %v5478_v8 }
 0x2ee   :  { %4729 = vmatpush3.bf16.msra.mxu0 %v5395_v47 }
 0x2ef   :  { %v4567_v24 = vpop.f32.mrb[20].mxu1  ;;  %4730 = vmatprep.subr.bf16.mxu0 %v5478_v8 }
 0x2f0   :  { %v4568_v25 = vpop.f32.mrb[21].mxu1 }
 0x2f1   :  { %v4569_v26 = vadd.f32 %v4568_v25, %v4567_v24  ;;  %v4570_v28 = vpop.f32.mrb[22].mxu1 }
 0x2f2   :  { %v4571_v30 = vpop.f32.mrb[23].mxu1  ;;  %4731 = vmatpush3.bf16.msra.mxu0 %v5396_v50 }
 0x2f3   :  { %v3379_v31 = vadd.f32 %v4569_v26, %v1703_v0  ;;  %4732 = vmatprep.subr.bf16.mxu0 %v5478_v8 }
 0x2f5   :  { %v3419_v4 = vadd.f32 %v4591_v15, %v3379_v31 }
 0x2f6   :  { %4733 = vmatpush3.bf16.msra.mxu0 %v5397_v27 }
 0x30f   :  { %v4611_v32 = vpop.f32.mrb[24].mxu1 }
 0x310   :  { %v4612_v33 = vpop.f32.mrb[25].mxu1 }
 0x311   :  { %v4613_v61 = vadd.f32 %v4612_v33, %v4611_v32  ;;  %v4614_v39 = vpop.f32.mrb[26].mxu1 }
 0x312   :  { %v4615_v40 = vpop.f32.mrb[27].mxu1 }
 0x313   :  { %v3459_v49 = vadd.f32 %v4613_v61, %v3419_v4 }
 0x315   :  { %v3499_v41 = vadd.f32 %v3498_v19, %v3459_v49 }
 0x317   :  { %v3508_v42 = vmax.f32 %v3499_v41, 0.0 }
 0x319   :  { %v3513_v43 = vpack.c.bf16 %v3508_v42, %v3508_v42 }
 0x31b   :  { %4715 = vmatmul.mubr.msk.bf16.vlgmr.msra.gmra.mrb[32].mxu1 %vm3821_vm4, %v3513_v43 }
 0x3a3   :  { %v4636_v51 = vpop.f32.mrb[28].mxu1 }
 0x3a4   :  { %v4637_v29 = vpop.f32.mrb[29].mxu1 }
 0x3a5   :  { %v4638_v21 = vadd.f32 %v4637_v29, %v4636_v51  ;;  %v4639_v54 = vpop.f32.mrb[30].mxu1 }
 0x3a6   :  { %v4640_v55 = vpop.f32.mrb[31].mxu1 }
 0x3a7   :  { %v3863_v59 = vadd.f32 %v4638_v21, %v4474_v37 }
 0x3ab   :  { %v4658_v56 = vpop.f32.mrb[20].mxu0 }
 0x3ac   :  { %v4659_v57 = vpop.f32.mrb[21].mxu0 }
 0x3ad   :  { %v4660_v60 = vadd.f32 %v4659_v57, %v4658_v56  ;;  %v4661_v36 = vpop.f32.mrb[22].mxu0 }
 0x3ae   :  { %v4662_v8 = vpop.f32.mrb[23].mxu0 }
 0x3af   :  { %v3903_v48 = vadd.f32 %v4660_v60, %v3863_v59 }
 0x3ee   :  { %v3942_v1 = vpop.f32.mrb[32].mxu1 }
 0x3ef   :  { %v3943_v38 = vadd.f32 %v3942_v1, %v3903_v48  ;;  %v4716_v2 = vpop.f32.mrb[33].mxu1 }
 0x3f0   :  { %v3945_v52 = vpop.f32.mrb[34].mxu1 }
 0x3f1   :  { %v3948_v3 = vmax.f32 %v3943_v38, 0.0  ;;  %v4717_v63 = vpop.f32.mrb[35].mxu1 }
 0x3f3   :  { %v3949_v58 = vpack.c.bf16 %v3948_v3, %v3948_v3 }
 0x3f5   :  { %4735 = vmatmul.mubr.bf16.vlgmr.msra.gmra.mrb[24].mxu0 %v3949_v58 }
 0x4c8   :  { %v4055_v53 = vpop.f32.mrb[24].mxu0 }
 0x4c9   :  { %v4056_v6 = vadd.f32 %v4514_v5, %v4055_v53  ;;  %v4736_v7 = vpop.f32.mrb[25].mxu0 }
 0x4ca   :  { %v4058_v9 = vpop.f32.mrb[26].mxu0 }
 0x4cb   :  { %4061 = vst [vmem:[%s5770_s9] sm:$0xff] %v4056_v6  ;;  %v4737_v10 = vpop.f32.mrb[27].mxu0 }
 0x4cc   :  { %4066 = vsyncpa [#allocation3], 1 }
 0x4cd   :  { %4067 = vsyncpa [#allocation5], 1 }

</bundles_post_ra>
